<compile_context>
chip_gen: v7x
topology: tpu7x:2x2x1
jax: 0.10.0
libtpu: 0.0.40
codegen_flags: <defaults>
</compile_context>

<pallas_src>
import math
from functools import partial

import jax
import jax.numpy as jnp
from jax.experimental import pallas as pl
from jax.experimental.pallas import tpu as pltpu

_BN_EPS = 1e-5


def _round_up(x, m):
    return (x + m - 1) // m * m


def _pick_tm(M):
    for t in (256, 128):
        if M % t == 0:
            return t
    return 128


# ----------------------------------------------------------------------------
# Pallas kernels: fused matmul + folded-BN affine (+ residual) (+ ReLU)
# ----------------------------------------------------------------------------

def _mm_affine_kernel(a_ref, w_ref, sb_ref, o_ref, *, relu):
    acc = jnp.dot(a_ref[...], w_ref[...], preferred_element_type=jnp.float32)
    y = acc * sb_ref[0:1, :] + sb_ref[1:2, :]
    if relu:
        y = jnp.maximum(y, 0.0)
    o_ref[...] = y.astype(o_ref.dtype)


def _mm_affine_res_kernel(a_ref, w_ref, sb_ref, r_ref, o_ref, *, relu):
    acc = jnp.dot(a_ref[...], w_ref[...], preferred_element_type=jnp.float32)
    y = acc * sb_ref[0:1, :] + sb_ref[1:2, :] + r_ref[...].astype(jnp.float32)
    if relu:
        y = jnp.maximum(y, 0.0)
    o_ref[...] = y.astype(o_ref.dtype)


def fused_matmul(a, w_p, sb, *, relu, residual=None):
    """a:(M,Kp) bf16 (Kp % 128 == 0), w_p:(Kp,Np) bf16, sb:(8,Np) f32,
    residual:(M,Np) bf16 or None.

    Returns maybe_relu((a @ w_p) * sb[0] + sb[1] [+ residual]) as (M, Np) bf16.
    Whole-K weight blocks; N is the outer grid axis so each (Kp, tn) weight
    block stays VMEM-resident across the inner M loop (no K reduction axis, no
    accumulator scratch). Outputs and residual are bf16 to halve HBM traffic.
    """
    M, Kp = a.shape
    Kw, Np = w_p.shape
    assert Kw == Kp and Kp % 128 == 0 and Np % 128 == 0

    tn = 256 if Np % 256 == 0 else 128
    tm = _pick_tm(M)
    Mp = _round_up(M, tm)
    if Mp != M:
        a = jnp.pad(a, ((0, Mp - M), (0, 0)))
        if residual is not None:
            residual = jnp.pad(residual, ((0, Mp - M), (0, 0)))

    n_blocks_n = Np // tn
    n_blocks_m = Mp // tm
    if n_blocks_n == 1:
        # Single N block: weight is trivially resident; put M outermost so the
        # megacore / dual-TC "parallel" split lands on the axis that has work.
        grid = (n_blocks_m, n_blocks_n)
        a_map = lambda i, j: (i, 0)
        w_map = lambda i, j: (0, j)
        s_map = lambda i, j: (0, j)
        o_map = lambda i, j: (i, j)
    else:
        # N outermost: the (Kp, tn) weight block index is constant across the
        # inner M loop, so Pallas keeps it VMEM-resident (no per-M-tile re-DMA).
        grid = (n_blocks_n, n_blocks_m)
        a_map = lambda j, i: (i, 0)
        w_map = lambda j, i: (0, j)
        s_map = lambda j, i: (0, j)
        o_map = lambda j, i: (i, j)

    in_specs = [
        pl.BlockSpec((tm, Kp), a_map),   # A tile (bf16)
        pl.BlockSpec((Kp, tn), w_map),   # whole-K weight slab (bf16)
        pl.BlockSpec((8, tn), s_map),    # scale (row 0) + bias (row 1)
    ]
    args = [a, w_p, sb]
    if residual is not None:
        in_specs.append(pl.BlockSpec((tm, tn), o_map))
        args.append(residual)
        kernel = partial(_mm_affine_res_kernel, relu=relu)
    else:
        kernel = partial(_mm_affine_kernel, relu=relu)

    out = pl.pallas_call(
        kernel,
        out_shape=jax.ShapeDtypeStruct((Mp, Np), jnp.bfloat16),
        grid=grid,
        in_specs=in_specs,
        out_specs=pl.BlockSpec((tm, tn), o_map),
        compiler_params=pltpu.CompilerParams(
            dimension_semantics=("parallel", "parallel"),
            vmem_limit_bytes=48 * 1024 * 1024),
    )(*args)
    return out[:M] if Mp != M else out


# ----------------------------------------------------------------------------
# Conv glue (im2col / 1x1 reshape in plain JAX; matmul in Pallas)
# ----------------------------------------------------------------------------

def _im2col_3x3(x, stride):
    """x: (B, H, W, Cp) bf16 NHWC -> (B*Ho*Wo, 9*Cp) bf16, Ho, Wo  (kernel=3, pad=1)."""
    B, H, W, C = x.shape
    Ho = (H + 2 - 3) // stride + 1
    Wo = (W + 2 - 3) // stride + 1
    xp = jnp.pad(x, ((0, 0), (1, 1), (1, 1), (0, 0)))
    views = []
    for i in range(3):
        for j in range(3):
            views.append(xp[:, i:i + stride * (Ho - 1) + 1:stride,
                             j:j + stride * (Wo - 1) + 1:stride, :])
    p = jnp.stack(views, axis=3)                      # (B, Ho, Wo, 9, Cp)
    return p.reshape(B * Ho * Wo, 9 * C), Ho, Wo


def conv1x1_bn(x, cp, *, stride=1, relu, residual=None):
    """1x1 conv (no bias) + folded BN (+ optional fused residual/ReLU), NHWC bf16."""
    if stride > 1:
        x = x[:, ::stride, ::stride, :]
    B, Ho, Wo, Cp = x.shape
    res_flat = None
    if residual is not None:
        res_flat = residual.reshape(B * Ho * Wo, residual.shape[-1])
    out = fused_matmul(x.reshape(B * Ho * Wo, Cp), cp['wp'], cp['sb'],
                       relu=relu, residual=res_flat)
    return out.reshape(B, Ho, Wo, -1)


def conv3x3_bn(x, cp, *, stride, relu):
    """3x3 conv (pad=1, no bias) + folded BN (+ ReLU), NHWC bf16."""
    B = x.shape[0]
    a, Ho, Wo = _im2col_3x3(x, stride)
    out = fused_matmul(a, cp['wp'], cp['sb'], relu=relu)
    return out.reshape(B, Ho, Wo, -1)


def bottleneck_forward_nhwc(x, params):
    """Mirrors BottleneckQ.forward on channel-padded NHWC bf16 activations."""
    stride = params['stride']

    # conv1: ActQ-in-factory is identity; 1x1 conv + BN + ReLU + ActQ (identity)
    out = conv1x1_bn(x, params['conv1'], stride=1, relu=True)
    # conv2: 3x3 conv (stride, pad=1) + BN + ReLU + ActQ (identity)
    out = conv3x3_bn(out, params['conv2'], stride=stride, relu=True)

    # residual branch
    if params['downsample'] is not None:
        residual = conv1x1_bn(x, params['downsample'], stride=stride, relu=False)
    else:
        residual = x

    # conv3: 1x1 conv + BN + signed ActQ (identity), then fused (+residual, ReLU, out ActQ)
    out = conv1x1_bn(out, params['conv3'], stride=1, relu=True, residual=residual)
    return out


def nchw_to_padded_nhwc(x_nchw):
    """Model-entry transform: NCHW -> NHWC, channel pad to 128, cast to bf16."""
    x = jnp.transpose(x_nchw, (0, 2, 3, 1))
    C = x.shape[-1]
    Cp = _round_up(C, 128)
    if Cp != C:
        x = jnp.pad(x, ((0, 0), (0, 0), (0, 0), (0, Cp - C)))
    return x.astype(jnp.bfloat16)


def padded_nhwc_to_nchw(x, c_real):
    """Model-exit transform: strip channel padding, NHWC -> NCHW."""
    return jnp.transpose(x[..., :c_real], (0, 3, 1, 2))


# ----------------------------------------------------------------------------
# Parameter construction (matches the ResNet init scheme; BN at fresh-init eval)
# Weights are pre-padded / pre-cast once here, not per forward call.
# ----------------------------------------------------------------------------

def make_conv_bn(key, cin, cout, k):
    n = k * k * cout
    std = math.sqrt(2.0 / n)
    w = std * jax.random.normal(key, (cout, cin, k, k), jnp.float32)   # OIHW
    scale = jnp.ones((cout,), jnp.float32) / jnp.sqrt(1.0 + _BN_EPS)   # gamma=1, var=1
    bias = jnp.zeros((cout,), jnp.float32)                             # beta=0, mean=0

    cinp = _round_up(cin, 128)
    coutp = _round_up(cout, 128)
    # OIHW -> (kh, kw, cin, cout), pad channels, flatten taps-major to match im2col.
    w_hwio = jnp.transpose(w, (2, 3, 1, 0))
    w_hwio_p = jnp.pad(w_hwio, ((0, 0), (0, 0), (0, cinp - cin), (0, coutp - cout)))
    wp = w_hwio_p.reshape(k * k * cinp, coutp).astype(jnp.bfloat16)

    sb = jnp.zeros((8, coutp), jnp.float32)
    sb = sb.at[0, :cout].set(scale).at[1, :cout].set(bias)
    return {'w': w, 'wp': wp, 'sb': sb, 'scale': scale, 'bias': bias,
            'k': k, 'cin': cin, 'cout': cout}


def make_bottleneck(key, inplanes, planes, stride):
    k1, k2, k3, k4 = jax.random.split(key, 4)
    p = {
        'stride': stride,
        'conv1': make_conv_bn(k1, inplanes, planes, 1),
        'conv2': make_conv_bn(k2, planes, planes, 3),
        'conv3': make_conv_bn(k3, planes, planes * 4, 1),
        'downsample': None,
    }
    if stride != 1 or inplanes != planes * 4:
        p['downsample'] = make_conv_bn(k4, inplanes, planes * 4, 1)
    return p


# ----------------------------------------------------------------------------
# Pure-JAX reference (lax.conv path, same bf16 activation/weight rounding)
# ----------------------------------------------------------------------------

def _conv_bn_ref(x_bf16, cp, *, stride, pad, relu):
    w_hwio = jnp.transpose(cp['w'], (2, 3, 1, 0)).astype(jnp.bfloat16)
    y = jax.lax.conv_general_dilated(
        x_bf16, w_hwio,
        window_strides=(stride, stride),
        padding=[(pad, pad), (pad, pad)],
        dimension_numbers=('NHWC', 'HWIO', 'NHWC'),
        preferred_element_type=jnp.float32)
    y = y * cp['scale'] + cp['bias']
    if relu:
        y = jnp.maximum(y, 0.0)
    return y


def bottleneck_ref(x_nhwc, params):
    x = x_nhwc.astype(jnp.bfloat16)
    stride = params['stride']
    out = _conv_bn_ref(x, params['conv1'], stride=1, pad=0, relu=True).astype(jnp.bfloat16)
    out = _conv_bn_ref(out, params['conv2'], stride=stride, pad=1, relu=True).astype(jnp.bfloat16)
    out = _conv_bn_ref(out, params['conv3'], stride=1, pad=0, relu=False)
    if params['downsample'] is not None:
        residual = _conv_bn_ref(x, params['downsample'], stride=stride, pad=0,
                                relu=False).astype(jnp.bfloat16)
    else:
        residual = x
    out = jnp.maximum(out + residual.astype(jnp.float32), 0.0)
    return out   # f32


# ----------------------------------------------------------------------------
# Demo
# ----------------------------------------------------------------------------

if __name__ == "__main__":
    key = jax.random.PRNGKey(0)
    pkey_a, pkey_b, xkey = jax.random.split(key, 3)

    batch, inplanes, planes, spatial = 2, 64, 16, 16
    x_nchw = jax.random.normal(xkey, (batch, inplanes, spatial, spatial), jnp.float32)

    # Block A: stride=2 with a downsample branch (1x1 stride-2 conv + BN).
    params_a = make_bottleneck(pkey_a, inplanes, planes, stride=2)
    # Block B: stride=1 with an identity residual (inplanes == planes * expansion).
    params_b = make_bottleneck(pkey_b, planes * 4, planes, stride=1)
    assert params_b['downsample'] is None

    def fwd(xx):
        h = nchw_to_padded_nhwc(xx)                 # single entry transpose/pad/cast
        h = bottleneck_forward_nhwc(h, params_a)    # NHWC bf16 throughout
        h = bottleneck_forward_nhwc(h, params_b)
        return padded_nhwc_to_nchw(h, planes * 4)   # single exit transpose

    y = jax.block_until_ready(jax.jit(fwd)(x_nchw))

    assert y.shape == (batch, planes * 4, spatial // 2, spatial // 2), y.shape
    y_f32 = y.astype(jnp.float32)
    assert bool(jnp.all(jnp.isfinite(y_f32)))

    # Reference check (lax.conv path with the same bf16 activation/weight rounding).
    x_nhwc = jnp.transpose(x_nchw, (0, 2, 3, 1))
    r = bottleneck_ref(x_nhwc, params_a)
    r = bottleneck_ref(r, params_b)
    y_ref = jnp.transpose(r, (0, 3, 1, 2))
    max_err = float(jnp.max(jnp.abs(y_f32 - y_ref)))
    ref_scale = float(jnp.max(jnp.abs(y_ref))) + 1e-6
    assert max_err <= 1e-2 * ref_scale + 1e-2, (max_err, ref_scale)

    print("KERNEL_OK")
</pallas_src>

<mosaic_0001>
module attributes {stable_mosaic.version = 11 : i64} {
  func.func @_mm_affine_kernel(%arg0: i32, %arg1: i32, %arg2: memref<128x128xbf16, #tpu.memory_space<vmem>>, %arg3: memref<128x128xbf16, #tpu.memory_space<vmem>>, %arg4: memref<8x128xf32, #tpu.memory_space<vmem>>, %arg5: memref<128x128xbf16, #tpu.memory_space<vmem>>) attributes {dimension_semantics = [#tpu.dimension_semantics<parallel>, #tpu.dimension_semantics<parallel>], iteration_bounds = array<i64: 1, 1>, scalar_prefetch = 0 : i64, scratch_operands = 0 : i64, tpu.core_type = #tpu.core_type<tc>, window_params = [{transform_indices = @transform_0, window_bounds = array<i64: 128, 128>}, {transform_indices = @transform_1, window_bounds = array<i64: 128, 128>}, {transform_indices = @transform_2, window_bounds = array<i64: 8, 128>}, {transform_indices = @transform_3, window_bounds = array<i64: 128, 128>}]} {
    %c0 = arith.constant 0 : index
    %c0_0 = arith.constant 0 : index
    %0 = vector.load %arg2[%c0, %c0_0] : memref<128x128xbf16, #tpu.memory_space<vmem>>, vector<128x128xbf16>
    %c0_1 = arith.constant 0 : index
    %c0_2 = arith.constant 0 : index
    %1 = vector.load %arg3[%c0_1, %c0_2] : memref<128x128xbf16, #tpu.memory_space<vmem>>, vector<128x128xbf16>
    %cst = arith.constant dense<0.000000e+00> : vector<128x128xf32>
    %2 = tpu.matmul %0, %1, %cst {dimension_numbers = #tpu.dot_dimension_numbers<[1], [0], [0], [1], [0, 0, 1, 1], [], []>} : vector<128x128xbf16>, vector<128x128xbf16>, vector<128x128xf32> -> vector<128x128xf32>
    %c0_3 = arith.constant 0 : index
    %c0_4 = arith.constant 0 : index
    %3 = vector.load %arg4[%c0_3, %c0_4] : memref<8x128xf32, #tpu.memory_space<vmem>>, vector<1x128xf32>
    %4 = vector.broadcast %3 : vector<1x128xf32> to vector<128x128xf32>
    %5 = arith.mulf %2, %4 : vector<128x128xf32>
    %c1 = arith.constant 1 : index
    %c0_5 = arith.constant 0 : index
    %6 = vector.load %arg4[%c1, %c0_5] : memref<8x128xf32, #tpu.memory_space<vmem>>, vector<1x128xf32>
    %7 = vector.broadcast %6 : vector<1x128xf32> to vector<128x128xf32>
    %8 = arith.addf %5, %7 : vector<128x128xf32>
    %9 = arith.truncf %8 : vector<128x128xf32> to vector<128x128xbf16>
    %c0_6 = arith.constant 0 : index
    %c0_7 = arith.constant 0 : index
    %10 = vector.load %arg5[%c0_6, %c0_7] : memref<128x128xbf16, #tpu.memory_space<vmem>>, vector<128x128xbf16>
    tpu.vector_store %arg5[%c0_6, %c0_7], %9 {strides = array<i32>} : memref<128x128xbf16, #tpu.memory_space<vmem>>, vector<128x128xbf16>,
    return
  }
  func.func @transform_0(%arg0: i32, %arg1: i32) -> (i32, i32) {
    %c0_i32 = arith.constant 0 : i32
    %c0_i32_0 = arith.constant 0 : i32
    return %arg0, %c0_i32 : i32, i32
  }
  func.func @transform_1(%arg0: i32, %arg1: i32) -> (i32, i32) {
    %c0_i32 = arith.constant 0 : i32
    %c0_i32_0 = arith.constant 0 : i32
    return %c0_i32, %arg1 : i32, i32
  }
  func.func @transform_2(%arg0: i32, %arg1: i32) -> (i32, i32) {
    %c0_i32 = arith.constant 0 : i32
    %c0_i32_0 = arith.constant 0 : i32
    return %c0_i32, %arg1 : i32, i32
  }
  func.func @transform_3(%arg0: i32, %arg1: i32) -> (i32, i32) {
    %c0_i32 = arith.constant 0 : i32
    return %arg0, %arg1 : i32, i32
  }
}

module attributes {stable_mosaic.version = 11 : i64} {
  func.func @_mm_affine_kernel(%arg0: i32, %arg1: i32, %arg2: memref<256x128xbf16, #tpu.memory_space<vmem>>, %arg3: memref<128x128xbf16, #tpu.memory_space<vmem>>, %arg4: memref<8x128xf32, #tpu.memory_space<vmem>>, %arg5: memref<256x128xbf16, #tpu.memory_space<vmem>>) attributes {dimension_semantics = [#tpu.dimension_semantics<parallel>, #tpu.dimension_semantics<parallel>], iteration_bounds = array<i64: 2, 1>, scalar_prefetch = 0 : i64, scratch_operands = 0 : i64, tpu.core_type = #tpu.core_type<tc>, window_params = [{transform_indices = @transform_0, window_bounds = array<i64: 256, 128>}, {transform_indices = @transform_1, window_bounds = array<i64: 128, 128>}, {transform_indices = @transform_2, window_bounds = array<i64: 8, 128>}, {transform_indices = @transform_3, window_bounds = array<i64: 256, 128>}]} {
    %c0 = arith.constant 0 : index
    %c0_0 = arith.constant 0 : index
    %0 = vector.load %arg2[%c0, %c0_0] : memref<256x128xbf16, #tpu.memory_space<vmem>>, vector<256x128xbf16>
    %c0_1 = arith.constant 0 : index
    %c0_2 = arith.constant 0 : index
    %1 = vector.load %arg3[%c0_1, %c0_2] : memref<128x128xbf16, #tpu.memory_space<vmem>>, vector<128x128xbf16>
    %cst = arith.constant dense<0.000000e+00> : vector<256x128xf32>
    %2 = tpu.matmul %0, %1, %cst {dimension_numbers = #tpu.dot_dimension_numbers<[1], [0], [0], [1], [0, 0, 1, 1], [], []>} : vector<256x128xbf16>, vector<128x128xbf16>, vector<256x128xf32> -> vector<256x128xf32>
    %c0_3 = arith.constant 0 : index
    %c0_4 = arith.constant 0 : index
    %3 = vector.load %arg4[%c0_3, %c0_4] : memref<8x128xf32, #tpu.memory_space<vmem>>, vector<1x128xf32>
    %4 = vector.broadcast %3 : vector<1x128xf32> to vector<256x128xf32>
    %5 = arith.mulf %2, %4 : vector<256x128xf32>
    %c1 = arith.constant 1 : index
    %c0_5 = arith.constant 0 : index
    %6 = vector.load %arg4[%c1, %c0_5] : memref<8x128xf32, #tpu.memory_space<vmem>>, vector<1x128xf32>
    %7 = vector.broadcast %6 : vector<1x128xf32> to vector<256x128xf32>
    %8 = arith.addf %5, %7 : vector<256x128xf32>
    %cst_6 = arith.constant 0.000000e+00 : f32
    %9 = vector.broadcast %cst_6 : f32 to vector<256x128xf32>
    %10 = arith.maximumf %8, %9 : vector<256x128xf32>
    %11 = arith.truncf %10 : vector<256x128xf32> to vector<256x128xbf16>
    %c0_7 = arith.constant 0 : index
    %c0_8 = arith.constant 0 : index
    %12 = vector.load %arg5[%c0_7, %c0_8] : memref<256x128xbf16, #tpu.memory_space<vmem>>, vector<256x128xbf16>
    tpu.vector_store %arg5[%c0_7, %c0_8], %11 {strides = array<i32>} : memref<256x128xbf16, #tpu.memory_space<vmem>>, vector<256x128xbf16>,
    return
  }
  func.func @transform_0(%arg0: i32, %arg1: i32) -> (i32, i32) {
    %c0_i32 = arith.constant 0 : i32
    %c0_i32_0 = arith.constant 0 : i32
    return %arg0, %c0_i32 : i32, i32
  }
  func.func @transform_1(%arg0: i32, %arg1: i32) -> (i32, i32) {
    %c0_i32 = arith.constant 0 : i32
    %c0_i32_0 = arith.constant 0 : i32
    return %c0_i32, %arg1 : i32, i32
  }
  func.func @transform_2(%arg0: i32, %arg1: i32) -> (i32, i32) {
    %c0_i32 = arith.constant 0 : i32
    %c0_i32_0 = arith.constant 0 : i32
    return %c0_i32, %arg1 : i32, i32
  }
  func.func @transform_3(%arg0: i32, %arg1: i32) -> (i32, i32) {
    %c0_i32 = arith.constant 0 : i32
    return %arg0, %arg1 : i32, i32
  }
}

module attributes {stable_mosaic.version = 11 : i64} {
  func.func @_mm_affine_kernel(%arg0: i32, %arg1: i32, %arg2: memref<128x1152xbf16, #tpu.memory_space<vmem>>, %arg3: memref<1152x128xbf16, #tpu.memory_space<vmem>>, %arg4: memref<8x128xf32, #tpu.memory_space<vmem>>, %arg5: memref<128x128xbf16, #tpu.memory_space<vmem>>) attributes {dimension_semantics = [#tpu.dimension_semantics<parallel>, #tpu.dimension_semantics<parallel>], iteration_bounds = array<i64: 1, 1>, scalar_prefetch = 0 : i64, scratch_operands = 0 : i64, tpu.core_type = #tpu.core_type<tc>, window_params = [{transform_indices = @transform_0, window_bounds = array<i64: 128, 1152>}, {transform_indices = @transform_1, window_bounds = array<i64: 1152, 128>}, {transform_indices = @transform_2, window_bounds = array<i64: 8, 128>}, {transform_indices = @transform_3, window_bounds = array<i64: 128, 128>}]} {
    %c0 = arith.constant 0 : index
    %c0_0 = arith.constant 0 : index
    %0 = vector.load %arg2[%c0, %c0_0] : memref<128x1152xbf16, #tpu.memory_space<vmem>>, vector<128x1152xbf16>
    %c0_1 = arith.constant 0 : index
    %c0_2 = arith.constant 0 : index
    %1 = vector.load %arg3[%c0_1, %c0_2] : memref<1152x128xbf16, #tpu.memory_space<vmem>>, vector<1152x128xbf16>
    %cst = arith.constant dense<0.000000e+00> : vector<128x128xf32>
    %2 = tpu.matmul %0, %1, %cst {dimension_numbers = #tpu.dot_dimension_numbers<[1], [0], [0], [1], [0, 0, 1, 1], [], []>} : vector<128x1152xbf16>, vector<1152x128xbf16>, vector<128x128xf32> -> vector<128x128xf32>
    %c0_3 = arith.constant 0 : index
    %c0_4 = arith.constant 0 : index
    %3 = vector.load %arg4[%c0_3, %c0_4] : memref<8x128xf32, #tpu.memory_space<vmem>>, vector<1x128xf32>
    %4 = vector.broadcast %3 : vector<1x128xf32> to vector<128x128xf32>
    %5 = arith.mulf %2, %4 : vector<128x128xf32>
    %c1 = arith.constant 1 : index
    %c0_5 = arith.constant 0 : index
    %6 = vector.load %arg4[%c1, %c0_5] : memref<8x128xf32, #tpu.memory_space<vmem>>, vector<1x128xf32>
    %7 = vector.broadcast %6 : vector<1x128xf32> to vector<128x128xf32>
    %8 = arith.addf %5, %7 : vector<128x128xf32>
    %cst_6 = arith.constant 0.000000e+00 : f32
    %9 = vector.broadcast %cst_6 : f32 to vector<128x128xf32>
    %10 = arith.maximumf %8, %9 : vector<128x128xf32>
    %11 = arith.truncf %10 : vector<128x128xf32> to vector<128x128xbf16>
    %c0_7 = arith.constant 0 : index
    %c0_8 = arith.constant 0 : index
    %12 = vector.load %arg5[%c0_7, %c0_8] : memref<128x128xbf16, #tpu.memory_space<vmem>>, vector<128x128xbf16>
    tpu.vector_store %arg5[%c0_7, %c0_8], %11 {strides = array<i32>} : memref<128x128xbf16, #tpu.memory_space<vmem>>, vector<128x128xbf16>,
    return
  }
  func.func @transform_0(%arg0: i32, %arg1: i32) -> (i32, i32) {
    %c0_i32 = arith.constant 0 : i32
    %c0_i32_0 = arith.constant 0 : i32
    return %arg0, %c0_i32 : i32, i32
  }
  func.func @transform_1(%arg0: i32, %arg1: i32) -> (i32, i32) {
    %c0_i32 = arith.constant 0 : i32
    %c0_i32_0 = arith.constant 0 : i32
    return %c0_i32, %arg1 : i32, i32
  }
  func.func @transform_2(%arg0: i32, %arg1: i32) -> (i32, i32) {
    %c0_i32 = arith.constant 0 : i32
    %c0_i32_0 = arith.constant 0 : i32
    return %c0_i32, %arg1 : i32, i32
  }
  func.func @transform_3(%arg0: i32, %arg1: i32) -> (i32, i32) {
    %c0_i32 = arith.constant 0 : i32
    return %arg0, %arg1 : i32, i32
  }
}

module attributes {stable_mosaic.version = 11 : i64} {
  func.func @_mm_affine_kernel(%arg0: i32, %arg1: i32, %arg2: memref<128x128xbf16, #tpu.memory_space<vmem>>, %arg3: memref<128x128xbf16, #tpu.memory_space<vmem>>, %arg4: memref<8x128xf32, #tpu.memory_space<vmem>>, %arg5: memref<128x128xbf16, #tpu.memory_space<vmem>>) attributes {dimension_semantics = [#tpu.dimension_semantics<parallel>, #tpu.dimension_semantics<parallel>], iteration_bounds = array<i64: 1, 1>, scalar_prefetch = 0 : i64, scratch_operands = 0 : i64, tpu.core_type = #tpu.core_type<tc>, window_params = [{transform_indices = @transform_0, window_bounds = array<i64: 128, 128>}, {transform_indices = @transform_1, window_bounds = array<i64: 128, 128>}, {transform_indices = @transform_2, window_bounds = array<i64: 8, 128>}, {transform_indices = @transform_3, window_bounds = array<i64: 128, 128>}]} {
    %c0 = arith.constant 0 : index
    %c0_0 = arith.constant 0 : index
    %0 = vector.load %arg2[%c0, %c0_0] : memref<128x128xbf16, #tpu.memory_space<vmem>>, vector<128x128xbf16>
    %c0_1 = arith.constant 0 : index
    %c0_2 = arith.constant 0 : index
    %1 = vector.load %arg3[%c0_1, %c0_2] : memref<128x128xbf16, #tpu.memory_space<vmem>>, vector<128x128xbf16>
    %cst = arith.constant dense<0.000000e+00> : vector<128x128xf32>
    %2 = tpu.matmul %0, %1, %cst {dimension_numbers = #tpu.dot_dimension_numbers<[1], [0], [0], [1], [0, 0, 1, 1], [], []>} : vector<128x128xbf16>, vector<128x128xbf16>, vector<128x128xf32> -> vector<128x128xf32>
    %c0_3 = arith.constant 0 : index
    %c0_4 = arith.constant 0 : index
    %3 = vector.load %arg4[%c0_3, %c0_4] : memref<8x128xf32, #tpu.memory_space<vmem>>, vector<1x128xf32>
    %4 = vector.broadcast %3 : vector<1x128xf32> to vector<128x128xf32>
    %5 = arith.mulf %2, %4 : vector<128x128xf32>
    %c1 = arith.constant 1 : index
    %c0_5 = arith.constant 0 : index
    %6 = vector.load %arg4[%c1, %c0_5] : memref<8x128xf32, #tpu.memory_space<vmem>>, vector<1x128xf32>
    %7 = vector.broadcast %6 : vector<1x128xf32> to vector<128x128xf32>
    %8 = arith.addf %5, %7 : vector<128x128xf32>
    %cst_6 = arith.constant 0.000000e+00 : f32
    %9 = vector.broadcast %cst_6 : f32 to vector<128x128xf32>
    %10 = arith.maximumf %8, %9 : vector<128x128xf32>
    %11 = arith.truncf %10 : vector<128x128xf32> to vector<128x128xbf16>
    %c0_7 = arith.constant 0 : index
    %c0_8 = arith.constant 0 : index
    %12 = vector.load %arg5[%c0_7, %c0_8] : memref<128x128xbf16, #tpu.memory_space<vmem>>, vector<128x128xbf16>
    tpu.vector_store %arg5[%c0_7, %c0_8], %11 {strides = array<i32>} : memref<128x128xbf16, #tpu.memory_space<vmem>>, vector<128x128xbf16>,
    return
  }
  func.func @transform_0(%arg0: i32, %arg1: i32) -> (i32, i32) {
    %c0_i32 = arith.constant 0 : i32
    %c0_i32_0 = arith.constant 0 : i32
    return %arg0, %c0_i32 : i32, i32
  }
  func.func @transform_1(%arg0: i32, %arg1: i32) -> (i32, i32) {
    %c0_i32 = arith.constant 0 : i32
    %c0_i32_0 = arith.constant 0 : i32
    return %c0_i32, %arg1 : i32, i32
  }
  func.func @transform_2(%arg0: i32, %arg1: i32) -> (i32, i32) {
    %c0_i32 = arith.constant 0 : i32
    %c0_i32_0 = arith.constant 0 : i32
    return %c0_i32, %arg1 : i32, i32
  }
  func.func @transform_3(%arg0: i32, %arg1: i32) -> (i32, i32) {
    %c0_i32 = arith.constant 0 : i32
    return %arg0, %arg1 : i32, i32
  }
}

module attributes {stable_mosaic.version = 11 : i64} {
  func.func @_mm_affine_res_kernel(%arg0: i32, %arg1: i32, %arg2: memref<128x128xbf16, #tpu.memory_space<vmem>>, %arg3: memref<128x128xbf16, #tpu.memory_space<vmem>>, %arg4: memref<8x128xf32, #tpu.memory_space<vmem>>, %arg5: memref<128x128xbf16, #tpu.memory_space<vmem>>, %arg6: memref<128x128xbf16, #tpu.memory_space<vmem>>) attributes {dimension_semantics = [#tpu.dimension_semantics<parallel>, #tpu.dimension_semantics<parallel>], iteration_bounds = array<i64: 1, 1>, scalar_prefetch = 0 : i64, scratch_operands = 0 : i64, tpu.core_type = #tpu.core_type<tc>, window_params = [{transform_indices = @transform_0, window_bounds = array<i64: 128, 128>}, {transform_indices = @transform_1, window_bounds = array<i64: 128, 128>}, {transform_indices = @transform_2, window_bounds = array<i64: 8, 128>}, {transform_indices = @transform_3, window_bounds = array<i64: 128, 128>}, {transform_indices = @transform_4, window_bounds = array<i64: 128, 128>}]} {
    %c0 = arith.constant 0 : index
    %c0_0 = arith.constant 0 : index
    %0 = vector.load %arg2[%c0, %c0_0] : memref<128x128xbf16, #tpu.memory_space<vmem>>, vector<128x128xbf16>
    %c0_1 = arith.constant 0 : index
    %c0_2 = arith.constant 0 : index
    %1 = vector.load %arg3[%c0_1, %c0_2] : memref<128x128xbf16, #tpu.memory_space<vmem>>, vector<128x128xbf16>
    %cst = arith.constant dense<0.000000e+00> : vector<128x128xf32>
    %2 = tpu.matmul %0, %1, %cst {dimension_numbers = #tpu.dot_dimension_numbers<[1], [0], [0], [1], [0, 0, 1, 1], [], []>} : vector<128x128xbf16>, vector<128x128xbf16>, vector<128x128xf32> -> vector<128x128xf32>
    %c0_3 = arith.constant 0 : index
    %c0_4 = arith.constant 0 : index
    %3 = vector.load %arg4[%c0_3, %c0_4] : memref<8x128xf32, #tpu.memory_space<vmem>>, vector<1x128xf32>
    %4 = vector.broadcast %3 : vector<1x128xf32> to vector<128x128xf32>
    %5 = arith.mulf %2, %4 : vector<128x128xf32>
    %c1 = arith.constant 1 : index
    %c0_5 = arith.constant 0 : index
    %6 = vector.load %arg4[%c1, %c0_5] : memref<8x128xf32, #tpu.memory_space<vmem>>, vector<1x128xf32>
    %7 = vector.broadcast %6 : vector<1x128xf32> to vector<128x128xf32>
    %8 = arith.addf %5, %7 : vector<128x128xf32>
    %c0_6 = arith.constant 0 : index
    %c0_7 = arith.constant 0 : index
    %9 = vector.load %arg5[%c0_6, %c0_7] : memref<128x128xbf16, #tpu.memory_space<vmem>>, vector<128x128xbf16>
    %10 = arith.extf %9 : vector<128x128xbf16> to vector<128x128xf32>
    %11 = arith.addf %8, %10 : vector<128x128xf32>
    %cst_8 = arith.constant 0.000000e+00 : f32
    %12 = vector.broadcast %cst_8 : f32 to vector<128x128xf32>
    %13 = arith.maximumf %11, %12 : vector<128x128xf32>
    %14 = arith.truncf %13 : vector<128x128xf32> to vector<128x128xbf16>
    %c0_9 = arith.constant 0 : index
    %c0_10 = arith.constant 0 : index
    %15 = vector.load %arg6[%c0_9, %c0_10] : memref<128x128xbf16, #tpu.memory_space<vmem>>, vector<128x128xbf16>
    tpu.vector_store %arg6[%c0_9, %c0_10], %14 {strides = array<i32>} : memref<128x128xbf16, #tpu.memory_space<vmem>>, vector<128x128xbf16>,
    return
  }
  func.func @transform_0(%arg0: i32, %arg1: i32) -> (i32, i32) {
    %c0_i32 = arith.constant 0 : i32
    %c0_i32_0 = arith.constant 0 : i32
    return %arg0, %c0_i32 : i32, i32
  }
  func.func @transform_1(%arg0: i32, %arg1: i32) -> (i32, i32) {
    %c0_i32 = arith.constant 0 : i32
    %c0_i32_0 = arith.constant 0 : i32
    return %c0_i32, %arg1 : i32, i32
  }
  func.func @transform_2(%arg0: i32, %arg1: i32) -> (i32, i32) {
    %c0_i32 = arith.constant 0 : i32
    %c0_i32_0 = arith.constant 0 : i32
    return %c0_i32, %arg1 : i32, i32
  }
  func.func @transform_3(%arg0: i32, %arg1: i32) -> (i32, i32) {
    %c0_i32 = arith.constant 0 : i32
    return %arg0, %arg1 : i32, i32
  }
  func.func @transform_4(%arg0: i32, %arg1: i32) -> (i32, i32) {
    %c0_i32 = arith.constant 0 : i32
    return %arg0, %arg1 : i32, i32
  }
}

</mosaic_0001>

<bundles_post_ra>
// kernel: fwd.9
= control target key start
LH: loop header
LB: loop body
LE: loop exit
PB: predicated region body
PF: predicated region fallthrough
CT: control target
= control target key end

     0   :  { %s641_s1 = inlined_call_operand.vmem [shape: bf16[128,128], index: 1, kind: input, shape index: {}]   ;;  %s642_s0 = inlined_call_operand.vmem [shape: bf16[128,128], index: 0, kind: input, shape index: {}]   ;;  %s643_s2 = inlined_call_operand.vmem [shape: f32[8,128], index: 2, kind: input, shape index: {}]   ;;  %s644_s3 = inlined_call_operand.vmem [shape: bf16[128,128], index: 3, kind: output, shape index: {}]  }
   0x1   :  { %v527_v0 = vld [vmem:[%s641_s1] sm:$0xff]   ;;  %v528_v1 = vld [vmem:[%s641_s1 + $0x8] sm:$0xff]   ;;  %v529_v2 = vld [vmem:[%s641_s1 + $0x10] sm:$0xff]  }
   0x2   :  { %479 = vmatprep.subr.bf16.mxu0 %v527_v0  ;;  %511 = vmatprep.subr.bf16.mxu1 %v527_v0  ;;  %v530_v3 = vld [vmem:[%s641_s1 + $0x18] sm:$0xff]   ;;  %v535_v4 = vld [vmem:[%s642_s0] sm:$0xff]   ;;  %v532_v7 = vld [vmem:[%s641_s1 + $0x28] sm:$0xff]  }
   0x3   :  { %480 = vmatpush3.bf16.msra.mxu0 %v527_v0  ;;  %519 = vmatpush3.bf16.msra.mxu1 %v527_v0  ;;  %v536_v5 = vld [vmem:[%s642_s0 + $0x20] sm:$0xff]   ;;  %v533_v8 = vld [vmem:[%s641_s1 + $0x30] sm:$0xff]   ;;  %v534_v9 = vld [vmem:[%s641_s1 + $0x38] sm:$0xff]  }
   0x4   :  { %481 = vmatprep.subr.bf16.mxu0 %v528_v1  ;;  %512 = vmatprep.subr.bf16.mxu1 %v528_v1  ;;  %v531_v6 = vld [vmem:[%s641_s1 + $0x20] sm:$0xff]   ;;  %v537_v10 = vld [vmem:[%s642_s0 + $0x8] sm:$0xff]   ;;  %v539_v12 = vld [vmem:[%s642_s0 + $0x10] sm:$0xff]  }
   0x5   :  { %495 = vmatprep.mubr.bf16.mxu0 %v535_v4  ;;  %503 = vmatprep.mubr.bf16.mxu1 %v536_v5  ;;  %v538_v11 = vld [vmem:[%s642_s0 + $0x28] sm:$0xff]   ;;  %v540_v13 = vld [vmem:[%s642_s0 + $0x30] sm:$0xff]   ;;  %v541_v14 = vld [vmem:[%s642_s0 + $0x18] sm:$0xff]  }
   0x6   :  { %v542_v15 = vld [vmem:[%s642_s0 + $0x38] sm:$0xff]   ;;  %v382_v16 = vld [vmem:[%s643_s2] ss:$0 sm:$0xff]  ;;  %v383_v23 = vld [vmem:[%s643_s2 + $0x1] ss:$0 sm:$0xff] }
   0x7   :  { %482 = vmatpush3.bf16.msra.mxu0 %v528_v1  ;;  %520 = vmatpush3.bf16.msra.mxu1 %v528_v1 }
   0x8   :  { %483 = vmatprep.subr.bf16.mxu0 %v529_v2  ;;  %513 = vmatprep.subr.bf16.mxu1 %v529_v2 }
   0xb   :  { %484 = vmatpush3.bf16.msra.mxu0 %v529_v2  ;;  %521 = vmatpush3.bf16.msra.mxu1 %v529_v2 }
   0xc   :  { %485 = vmatprep.subr.bf16.mxu0 %v530_v3  ;;  %514 = vmatprep.subr.bf16.mxu1 %v530_v3 }
   0xf   :  { %486 = vmatpush3.bf16.msra.mxu0 %v530_v3  ;;  %522 = vmatpush3.bf16.msra.mxu1 %v530_v3 }
  0x10   :  { %487 = vmatprep.subr.bf16.mxu0 %v531_v6  ;;  %515 = vmatprep.subr.bf16.mxu1 %v531_v6 }
  0x13   :  { %488 = vmatpush3.bf16.msra.mxu0 %v531_v6  ;;  %523 = vmatpush3.bf16.msra.mxu1 %v531_v6 }
  0x14   :  { %489 = vmatprep.subr.bf16.mxu0 %v532_v7  ;;  %516 = vmatprep.subr.bf16.mxu1 %v532_v7 }
  0x17   :  { %490 = vmatpush3.bf16.msra.mxu0 %v532_v7  ;;  %524 = vmatpush3.bf16.msra.mxu1 %v532_v7 }
  0x18   :  { %491 = vmatprep.subr.bf16.mxu0 %v533_v8  ;;  %517 = vmatprep.subr.bf16.mxu1 %v533_v8 }
  0x1b   :  { %492 = vmatpush3.bf16.msra.mxu0 %v533_v8  ;;  %525 = vmatpush3.bf16.msra.mxu1 %v533_v8 }
  0x1c   :  { %493 = vmatprep.subr.bf16.mxu0 %v534_v9  ;;  %518 = vmatprep.subr.bf16.mxu1 %v534_v9 }
  0x1f   :  { %494 = vmatpush3.bf16.msra.mxu0 %v534_v9  ;;  %526 = vmatpush3.bf16.msra.mxu1 %v534_v9 }
  0x22   :  { %496 = vmatmul.mubr.bf16.vlgmr.msra.gmra.mrb[0].mxu0 %v537_v10  ;;  %504 = vmatmul.mubr.bf16.vlgmr.msra.gmra.mrb[0].mxu1 %v538_v11 }
  0x23   :  { %499 = vmatprep.mubr.bf16.mxu0 %v539_v12  ;;  %507 = vmatprep.mubr.bf16.mxu1 %v540_v13 }
  0x2a   :  { %500 = vmatmul.mubr.bf16.gmra.mrb[4].mxu0 %v541_v14  ;;  %508 = vmatmul.mubr.bf16.gmra.mrb[4].mxu1 %v542_v15 }
  0xf5   :  { %v497_v17 = vpop.f32.mrb[0].mxu0  ;;  %v505_v18 = vpop.f32.mrb[0].mxu1 }
  0xf6   :  { %v247_v19 = vmul.f32 %v497_v17, %v382_v16  ;;  %v255_v20 = vmul.f32 %v505_v18, %v382_v16  ;;  %v177_v21 = vpop.f32.mrb[1].mxu0  ;;  %v209_v22 = vpop.f32.mrb[1].mxu1 }
  0xf7   :  { %v245_v24 = vmul.f32 %v382_v16, %v177_v21  ;;  %v253_v25 = vmul.f32 %v382_v16, %v209_v22  ;;  %v498_v26 = vpop.f32.mrb[2].mxu0  ;;  %v506_v27 = vpop.f32.mrb[2].mxu1 }
  0xf8   :  { %v248_v28 = vmul.f32 %v498_v26, %v382_v16  ;;  %v256_v29 = vmul.f32 %v506_v27, %v382_v16  ;;  %v180_v30 = vpop.f32.mrb[3].mxu0  ;;  %v212_v31 = vpop.f32.mrb[3].mxu1  ;;  %v268_v34 = vadd.f32 %v383_v23, %v247_v19  ;;  %v276_v35 = vadd.f32 %v383_v23, %v255_v20 }
  0xf9   :  { %v246_v32 = vmul.f32 %v382_v16, %v180_v30  ;;  %v254_v33 = vmul.f32 %v382_v16, %v212_v31  ;;  %v266_v38 = vadd.f32 %v383_v23, %v245_v24  ;;  %v274_v39 = vadd.f32 %v383_v23, %v253_v25 }
  0xfa   :  { %v269_v36 = vadd.f32 %v383_v23, %v248_v28  ;;  %v277_v37 = vadd.f32 %v383_v23, %v256_v29 }
  0xfb   :  { %v267_v40 = vadd.f32 %v383_v23, %v246_v32  ;;  %v275_v41 = vadd.f32 %v383_v23, %v254_v33 }
  0xfc   :  { %v424_v42 = vpack.c.bf16 %v269_v36, %v268_v34  ;;  %v444_v43 = vpack.c.bf16 %v277_v37, %v276_v35 }
  0xfd   :  { %v419_v44 = vpack.c.bf16 %v267_v40, %v266_v38  ;;  %v439_v45 = vpack.c.bf16 %v275_v41, %v274_v39  ;;  %v501_v46 = vpop.f32.mrb[4].mxu0  ;;  %v509_v47 = vpop.f32.mrb[4].mxu1 }
  0xfe   :  { %456 = vst [vmem:[%s644_s3 + $0x8] sm:$0xff] %v424_v42   ;;  %460 = vst [vmem:[%s644_s3 + $0x28] sm:$0xff] %v444_v43   ;;  %v251_v48 = vmul.f32 %v501_v46, %v382_v16  ;;  %v259_v49 = vmul.f32 %v509_v47, %v382_v16  ;;  %v193_v50 = vpop.f32.mrb[5].mxu0  ;;  %v225_v51 = vpop.f32.mrb[5].mxu1 }
  0xff   :  { %420 = vst [vmem:[%s644_s3] sm:$0xff] %v419_v44   ;;  %459 = vst [vmem:[%s644_s3 + $0x20] sm:$0xff] %v439_v45   ;;  %v249_v52 = vmul.f32 %v382_v16, %v193_v50  ;;  %v257_v53 = vmul.f32 %v382_v16, %v225_v51  ;;  %v502_v54 = vpop.f32.mrb[6].mxu0  ;;  %v510_v55 = vpop.f32.mrb[6].mxu1 }
 0x100   :  { %v252_v56 = vmul.f32 %v502_v54, %v382_v16  ;;  %v260_v57 = vmul.f32 %v510_v55, %v382_v16  ;;  %v196_v58 = vpop.f32.mrb[7].mxu0  ;;  %v228_v59 = vpop.f32.mrb[7].mxu1  ;;  %v272_v62 = vadd.f32 %v383_v23, %v251_v48  ;;  %v280_v63 = vadd.f32 %v383_v23, %v259_v49 }
 0x101   :  { %v250_v60 = vmul.f32 %v382_v16, %v196_v58  ;;  %v258_v61 = vmul.f32 %v382_v16, %v228_v59  ;;  %v270_v2 = vadd.f32 %v383_v23, %v249_v52  ;;  %v278_v3 = vadd.f32 %v383_v23, %v257_v53 }
 0x102   :  { %v273_v0 = vadd.f32 %v383_v23, %v252_v56  ;;  %v281_v1 = vadd.f32 %v383_v23, %v260_v57 }
 0x103   :  { %v271_v4 = vadd.f32 %v383_v23, %v250_v60  ;;  %v279_v5 = vadd.f32 %v383_v23, %v258_v61 }
 0x104   :  { %v434_v6 = vpack.c.bf16 %v273_v0, %v272_v62  ;;  %v454_v7 = vpack.c.bf16 %v281_v1, %v280_v63 }
 0x105   :  { %v429_v8 = vpack.c.bf16 %v271_v4, %v270_v2  ;;  %v449_v9 = vpack.c.bf16 %v279_v5, %v278_v3 }
 0x106   :  { %458 = vst [vmem:[%s644_s3 + $0x18] sm:$0xff] %v434_v6   ;;  %462 = vst [vmem:[%s644_s3 + $0x38] sm:$0xff] %v454_v7  }
 0x107   :  { %457 = vst [vmem:[%s644_s3 + $0x10] sm:$0xff] %v429_v8   ;;  %461 = vst [vmem:[%s644_s3 + $0x30] sm:$0xff] %v449_v9  }

// kernel: fwd.7
= control target key start
LH: loop header
LB: loop body
LE: loop exit
PB: predicated region body
PF: predicated region fallthrough
CT: control target
= control target key end

     0   :  { %s1331_s12 = smov 0   ;;  %s1333_s13 = smov 0   ;;  %s1505_s0 = inlined_call_operand.vmem [shape: bf16[512,128], index: 0, kind: input, shape index: {}]   ;;  %s1506_s1 = inlined_call_operand.vmem [shape: bf16[128,128], index: 1, kind: input, shape index: {}]   ;;  %s1507_s2 = inlined_call_operand.vmem [shape: f32[8,128], index: 2, kind: input, shape index: {}]   ;;  %s1508_s3 = inlined_call_operand.vmem [shape: bf16[512,128], index: 3, kind: output, shape index: {}]  }
   0x1   :  { %s1335_s14 = smov 0  }
   0x2 LB: > { %s25_s15 = sadd.s32 1, %s1305_s13  ;;  %p959_p0 = scmp.ge.s32.totalorder %s1309_s14, 1  ;;  %s1309_s14 = sphi %s1335_s14, %s13_s14   ;;  %s1305_s13 = sphi %s1333_s13, %s1510_s13   ;;  %s1301_s12 = sphi %s1331_s12, %s1509_s12  }
   0x3   : > { %p27_p1 = scmp.ge.s32.totalorder %s25_s15, 2  ;;  %p170_p2 = scmp.lt.s32.totalorder %s1309_s14, 3 }
   0x5   : > { %s1512_s15 = smov (%p27_p1, %s25_s15), 0  ;;  %p171_p3 = pnand %p959_p0, %p170_p2 }
   0x6   : > { %v1263_v0 = vld [vmem:[%s1506_s1] sm:$0xff] (!%p171_p3)   ;;  %s960_s18 = sshll.u32 (!%p171_p3), %s1301_s12, 5  ;;  %v1264_v1 = vld [vmem:[%s1506_s1 + $0x8] sm:$0xff] (!%p171_p3)   ;;  %v1265_v2 = vld [vmem:[%s1506_s1 + $0x10] sm:$0xff] (!%p171_p3)  }
   0x7   : > { %174 = sbr.rel (%p171_p3) target bundleno = 288 (0x120), region = 32  ;;  %p206_p4 = scmp.lt.s32.totalorder (!%p171_p3), %s960_s18, 63  ;;  %1175 = vmatprep.subr.bf16.mxu0 (!%p171_p3), %v1263_v0  ;;  %1223 = vmatprep.subr.bf16.mxu1 (!%p171_p3), %v1263_v0  ;;  %v1266_v3 = vld [vmem:[%s1506_s1 + $0x18] sm:$0xff] (!%p171_p3)   ;;  %v1267_v6 = vld [vmem:[%s1506_s1 + $0x20] sm:$0xff] (!%p171_p3)   ;;  %v1268_v7 = vld [vmem:[%s1506_s1 + $0x28] sm:$0xff] (!%p171_p3)  }
   0x8   : > { %1176 = vmatpush3.bf16.msra.mxu0 (!%p171_p3), %v1263_v0  ;;  %1231 = vmatpush3.bf16.msra.mxu1 (!%p171_p3), %v1263_v0  ;;  %v1269_v8 = vld [vmem:[%s1506_s1 + $0x30] sm:$0xff] (!%p171_p3)   ;;  %v1270_v9 = vld [vmem:[%s1506_s1 + $0x38] sm:$0xff] (!%p171_p3)   ;;  %v1402_v24 = vld [vmem:[%s1507_s2] ss:$0 sm:$0xff] (!%p171_p3) }
   0x9   : > { %1177 = vmatprep.subr.bf16.mxu0 (!%p171_p3), %v1264_v1  ;;  %1224 = vmatprep.subr.bf16.mxu1 (!%p171_p3), %v1264_v1  ;;  %v1407_v26 = vld [vmem:[%s1507_s2 + $0x1] ss:$0 sm:$0xff] (!%p171_p3) }
   0xc   : > { %1178 = vmatpush3.bf16.msra.mxu0 (!%p171_p3), %v1264_v1  ;;  %1232 = vmatpush3.bf16.msra.mxu1 (!%p171_p3), %v1264_v1 }
   0xd   : > { %1179 = vmatprep.subr.bf16.mxu0 (!%p171_p3), %v1265_v2  ;;  %1225 = vmatprep.subr.bf16.mxu1 (!%p171_p3), %v1265_v2 }
   0xe   : > { %s1514_s18 = smov (!%p206_p4, %s960_s18), 63 }
   0xf   : > { %s961_s23 = sshll.u32 %s1514_s18, 2 }
  0x10   : > { %s1366_s26 = scalar_lea.vmem %s1505_s0, %s961_s23  ;;  %1180 = vmatpush3.bf16.msra.mxu0 %v1265_v2  ;;  %1233 = vmatpush3.bf16.msra.mxu1 %v1265_v2  ;;  %s1430_s20 = scalar_lea.vmem %s1508_s3, %s961_s23 }
  0x11   : > { %v1271_v4 = vld [vmem:[%s1366_s26] sm:$0xff]   ;;  %1181 = vmatprep.subr.bf16.mxu0 %v1266_v3  ;;  %1226 = vmatprep.subr.bf16.mxu1 %v1266_v3  ;;  %v1273_v10 = vld [vmem:[%s1366_s26 + $0x8] sm:$0xff]   ;;  %v1275_v12 = vld [vmem:[%s1366_s26 + $0x10] sm:$0xff]  }
  0x12   : > { %v1272_v5 = vld [vmem:[%s1366_s26 + $0x40] sm:$0xff]   ;;  %1191 = vmatprep.mubr.bf16.mxu0 %v1271_v4  ;;  %v1274_v11 = vld [vmem:[%s1366_s26 + $0x48] sm:$0xff]   ;;  %v1276_v13 = vld [vmem:[%s1366_s26 + $0x50] sm:$0xff]  }
  0x13   : > { %1207 = vmatprep.mubr.bf16.mxu1 %v1272_v5  ;;  %v1277_v14 = vld [vmem:[%s1366_s26 + $0x18] sm:$0xff]   ;;  %v1279_v16 = vld [vmem:[%s1366_s26 + $0x20] sm:$0xff]   ;;  %v1281_v18 = vld [vmem:[%s1366_s26 + $0x28] sm:$0xff]  }
  0x14   : > { %1182 = vmatpush3.bf16.msra.mxu0 %v1266_v3  ;;  %1234 = vmatpush3.bf16.msra.mxu1 %v1266_v3  ;;  %v1278_v15 = vld [vmem:[%s1366_s26 + $0x58] sm:$0xff]   ;;  %v1280_v17 = vld [vmem:[%s1366_s26 + $0x60] sm:$0xff]   ;;  %v1282_v19 = vld [vmem:[%s1366_s26 + $0x68] sm:$0xff]  }
  0x15   : > { %1183 = vmatprep.subr.bf16.mxu0 %v1267_v6  ;;  %1227 = vmatprep.subr.bf16.mxu1 %v1267_v6  ;;  %v1283_v20 = vld [vmem:[%s1366_s26 + $0x30] sm:$0xff]   ;;  %v1285_v22 = vld [vmem:[%s1366_s26 + $0x38] sm:$0xff]  }
  0x16   : > { %v1284_v21 = vld [vmem:[%s1366_s26 + $0x70] sm:$0xff]   ;;  %v1286_v23 = vld [vmem:[%s1366_s26 + $0x78] sm:$0xff]  }
  0x18   : > { %1184 = vmatpush3.bf16.msra.mxu0 %v1267_v6  ;;  %1235 = vmatpush3.bf16.msra.mxu1 %v1267_v6 }
  0x19   : > { %1185 = vmatprep.subr.bf16.mxu0 %v1268_v7  ;;  %1228 = vmatprep.subr.bf16.mxu1 %v1268_v7 }
  0x1c   : > { %1186 = vmatpush3.bf16.msra.mxu0 %v1268_v7  ;;  %1236 = vmatpush3.bf16.msra.mxu1 %v1268_v7 }
  0x1d   : > { %1187 = vmatprep.subr.bf16.mxu0 %v1269_v8  ;;  %1229 = vmatprep.subr.bf16.mxu1 %v1269_v8 }
  0x20   : > { %1188 = vmatpush3.bf16.msra.mxu0 %v1269_v8  ;;  %1237 = vmatpush3.bf16.msra.mxu1 %v1269_v8 }
  0x21   : > { %1189 = vmatprep.subr.bf16.mxu0 %v1270_v9  ;;  %1230 = vmatprep.subr.bf16.mxu1 %v1270_v9 }
  0x24   : > { %1190 = vmatpush3.bf16.msra.mxu0 %v1270_v9  ;;  %1238 = vmatpush3.bf16.msra.mxu1 %v1270_v9 }
  0x27   : > { %1192 = vmatmul.mubr.bf16.vlgmr.msra.gmra.mrb[0].mxu0 %v1273_v10  ;;  %1208 = vmatmul.mubr.bf16.vlgmr.msra.gmra.mrb[0].mxu1 %v1274_v11 }
  0x28   : > { %1195 = vmatprep.mubr.bf16.mxu0 %v1275_v12  ;;  %1211 = vmatprep.mubr.bf16.mxu1 %v1276_v13 }
  0x2f   : > { %1196 = vmatmul.mubr.bf16.gmra.mrb[4].mxu0 %v1277_v14  ;;  %1212 = vmatmul.mubr.bf16.gmra.mrb[4].mxu1 %v1278_v15 }
  0x30   : > { %1199 = vmatprep.mubr.bf16.mxu0 %v1279_v16  ;;  %1215 = vmatprep.mubr.bf16.mxu1 %v1280_v17 }
  0x37   : > { %1200 = vmatmul.mubr.bf16.gmra.mrb[8].mxu0 %v1281_v18  ;;  %1216 = vmatmul.mubr.bf16.gmra.mrb[8].mxu1 %v1282_v19 }
  0x38   : > { %1203 = vmatprep.mubr.bf16.mxu0 %v1283_v20  ;;  %1219 = vmatprep.mubr.bf16.mxu1 %v1284_v21 }
  0x3f   : > { %1204 = vmatmul.mubr.bf16.gmra.mrb[12].mxu0 %v1285_v22  ;;  %1220 = vmatmul.mubr.bf16.gmra.mrb[12].mxu1 %v1286_v23 }
  0xfa   : > { %v1193_v25 = vpop.f32.mrb[0].mxu0  ;;  %v1209_v27 = vpop.f32.mrb[0].mxu1 }
  0xfb   : > { %v589_v28 = vmul.f32 %v1193_v25, %v1402_v24  ;;  %v605_v29 = vmul.f32 %v1209_v27, %v1402_v24  ;;  %v455_v30 = vpop.f32.mrb[1].mxu0  ;;  %v519_v31 = vpop.f32.mrb[1].mxu1 }
  0xfc   : > { %v587_v32 = vmul.f32 %v1402_v24, %v455_v30  ;;  %v603_v33 = vmul.f32 %v1402_v24, %v519_v31  ;;  %v1194_v34 = vpop.f32.mrb[2].mxu0  ;;  %v1210_v35 = vpop.f32.mrb[2].mxu1 }
  0xfd   : > { %v626_v36 = vadd.f32 %v1407_v26, %v589_v28  ;;  %v642_v37 = vadd.f32 %v1407_v26, %v605_v29  ;;  %v590_v38 = vmul.f32 %v1194_v34, %v1402_v24  ;;  %v606_v39 = vmul.f32 %v1210_v35, %v1402_v24  ;;  %v458_v40 = vpop.f32.mrb[3].mxu0  ;;  %v522_v41 = vpop.f32.mrb[3].mxu1 }
  0xfe   : > { %v624_v42 = vadd.f32 %v1407_v26, %v587_v32  ;;  %v640_v43 = vadd.f32 %v1407_v26, %v603_v33  ;;  %v588_v44 = vmul.f32 %v1402_v24, %v458_v40  ;;  %v604_v45 = vmul.f32 %v1402_v24, %v522_v41 }
  0xff   : > { %v627_v46 = vadd.f32 %v1407_v26, %v590_v38  ;;  %v643_v47 = vadd.f32 %v1407_v26, %v606_v39  ;;  %v658_v50 = vmax.f32 %v626_v36, 0.0  ;;  %v674_v51 = vmax.f32 %v642_v37, 0.0 }
 0x100   : > { %v625_v48 = vadd.f32 %v1407_v26, %v588_v44  ;;  %v641_v49 = vadd.f32 %v1407_v26, %v604_v45  ;;  %v656_v54 = vmax.f32 %v624_v42, 0.0  ;;  %v672_v55 = vmax.f32 %v640_v43, 0.0 }
 0x101   : > { %v659_v52 = vmax.f32 %v627_v46, 0.0  ;;  %v675_v53 = vmax.f32 %v643_v47, 0.0 }
 0x102   : > { %v657_v56 = vmax.f32 %v625_v48, 0.0  ;;  %v673_v57 = vmax.f32 %v641_v49, 0.0  ;;  %v1197_v58 = vpop.f32.mrb[4].mxu0  ;;  %v1213_v59 = vpop.f32.mrb[4].mxu1 }
 0x103   : > { %v1064_v60 = vpack.c.bf16 %v659_v52, %v658_v50  ;;  %v1104_v61 = vpack.c.bf16 %v675_v53, %v674_v51  ;;  %v593_v62 = vmul.f32 %v1197_v58, %v1402_v24  ;;  %v609_v63 = vmul.f32 %v1213_v59, %v1402_v24  ;;  %v471_v0 = vpop.f32.mrb[5].mxu0  ;;  %v535_v1 = vpop.f32.mrb[5].mxu1 }
 0x104   : > { %v1059_v2 = vpack.c.bf16 %v657_v56, %v656_v54  ;;  %v1099_v3 = vpack.c.bf16 %v673_v57, %v672_v55  ;;  %v591_v4 = vmul.f32 %v1402_v24, %v471_v0  ;;  %v607_v5 = vmul.f32 %v1402_v24, %v535_v1  ;;  %v1198_v6 = vpop.f32.mrb[6].mxu0  ;;  %v1214_v7 = vpop.f32.mrb[6].mxu1 }
 0x105   : > { %1136 = vst [vmem:[%s1430_s20 + $0x8] sm:$0xff] %v1064_v60   ;;  %1144 = vst [vmem:[%s1430_s20 + $0x48] sm:$0xff] %v1104_v61   ;;  %v630_v8 = vadd.f32 %v1407_v26, %v593_v62  ;;  %v646_v9 = vadd.f32 %v1407_v26, %v609_v63  ;;  %v594_v10 = vmul.f32 %v1198_v6, %v1402_v24  ;;  %v474_v12 = vpop.f32.mrb[7].mxu0  ;;  %v538_v13 = vpop.f32.mrb[7].mxu1 }
 0x106   : > { %v610_v11 = vmul.f32 %v1214_v7, %v1402_v24  ;;  %1060 = vst [vmem:[%s1430_s20] sm:$0xff] %v1059_v2   ;;  %1143 = vst [vmem:[%s1430_s20 + $0x40] sm:$0xff] %v1099_v3   ;;  %v628_v14 = vadd.f32 %v1407_v26, %v591_v4  ;;  %v644_v15 = vadd.f32 %v1407_v26, %v607_v5 }
 0x107   : > { %v592_v16 = vmul.f32 %v1402_v24, %v474_v12  ;;  %v608_v17 = vmul.f32 %v1402_v24, %v538_v13  ;;  %v631_v18 = vadd.f32 %v1407_v26, %v594_v10  ;;  %v662_v22 = vmax.f32 %v630_v8, 0.0 }
 0x108   : > { %v647_v19 = vadd.f32 %v1407_v26, %v610_v11  ;;  %v678_v23 = vmax.f32 %v646_v9, 0.0  ;;  %v660_v28 = vmax.f32 %v628_v14, 0.0  ;;  %v676_v29 = vmax.f32 %v644_v15, 0.0 }
 0x109   : > { %v629_v20 = vadd.f32 %v1407_v26, %v592_v16  ;;  %v645_v21 = vadd.f32 %v1407_v26, %v608_v17  ;;  %v663_v25 = vmax.f32 %v631_v18, 0.0 }
 0x10a   : > { %v679_v27 = vmax.f32 %v647_v19, 0.0  ;;  %v1201_v32 = vpop.f32.mrb[8].mxu0  ;;  %v1217_v33 = vpop.f32.mrb[8].mxu1 }
 0x10b   : > { %v661_v30 = vmax.f32 %v629_v20, 0.0  ;;  %v677_v31 = vmax.f32 %v645_v21, 0.0  ;;  %v1074_v34 = vpack.c.bf16 %v663_v25, %v662_v22  ;;  %v597_v36 = vmul.f32 %v1201_v32, %v1402_v24  ;;  %v487_v38 = vpop.f32.mrb[9].mxu0  ;;  %v551_v39 = vpop.f32.mrb[9].mxu1 }
 0x10c   : > { %v1114_v35 = vpack.c.bf16 %v679_v27, %v678_v23  ;;  %v613_v37 = vmul.f32 %v1217_v33, %v1402_v24  ;;  %v595_v42 = vmul.f32 %v1402_v24, %v487_v38  ;;  %v611_v43 = vmul.f32 %v1402_v24, %v551_v39  ;;  %v1202_v44 = vpop.f32.mrb[10].mxu0  ;;  %v1218_v45 = vpop.f32.mrb[10].mxu1 }
 0x10d   : > { %v1069_v40 = vpack.c.bf16 %v661_v30, %v660_v28  ;;  %v1109_v41 = vpack.c.bf16 %v677_v31, %v676_v29  ;;  %1138 = vst [vmem:[%s1430_s20 + $0x18] sm:$0xff] %v1074_v34   ;;  %v634_v46 = vadd.f32 %v1407_v26, %v597_v36  ;;  %v598_v48 = vmul.f32 %v1202_v44, %v1402_v24  ;;  %v490_v50 = vpop.f32.mrb[11].mxu0  ;;  %v554_v51 = vpop.f32.mrb[11].mxu1 }
 0x10e   : > { %1146 = vst [vmem:[%s1430_s20 + $0x58] sm:$0xff] %v1114_v35   ;;  %v650_v47 = vadd.f32 %v1407_v26, %v613_v37  ;;  %v614_v49 = vmul.f32 %v1218_v45, %v1402_v24  ;;  %v632_v52 = vadd.f32 %v1407_v26, %v595_v42  ;;  %v648_v53 = vadd.f32 %v1407_v26, %v611_v43 }
 0x10f   : > { %1137 = vst [vmem:[%s1430_s20 + $0x10] sm:$0xff] %v1069_v40   ;;  %1145 = vst [vmem:[%s1430_s20 + $0x50] sm:$0xff] %v1109_v41   ;;  %v596_v54 = vmul.f32 %v1402_v24, %v490_v50  ;;  %v612_v55 = vmul.f32 %v1402_v24, %v554_v51  ;;  %v635_v56 = vadd.f32 %v1407_v26, %v598_v48  ;;  %v666_v60 = vmax.f32 %v634_v46, 0.0 }
 0x110   : > { %v651_v57 = vadd.f32 %v1407_v26, %v614_v49  ;;  %v682_v61 = vmax.f32 %v650_v47, 0.0  ;;  %v664_v0 = vmax.f32 %v632_v52, 0.0  ;;  %v680_v1 = vmax.f32 %v648_v53, 0.0 }
 0x111   : > { %v633_v58 = vadd.f32 %v1407_v26, %v596_v54  ;;  %v649_v59 = vadd.f32 %v1407_v26, %v612_v55  ;;  %v667_v62 = vmax.f32 %v635_v56, 0.0 }
 0x112   : > { %v683_v63 = vmax.f32 %v651_v57, 0.0  ;;  %v1205_v4 = vpop.f32.mrb[12].mxu0  ;;  %v1221_v5 = vpop.f32.mrb[12].mxu1 }
 0x113   : > { %v665_v2 = vmax.f32 %v633_v58, 0.0  ;;  %v681_v3 = vmax.f32 %v649_v59, 0.0  ;;  %v1084_v6 = vpack.c.bf16 %v667_v62, %v666_v60  ;;  %v601_v8 = vmul.f32 %v1205_v4, %v1402_v24  ;;  %v503_v10 = vpop.f32.mrb[13].mxu0  ;;  %v567_v11 = vpop.f32.mrb[13].mxu1 }
 0x114   : > { %v1124_v7 = vpack.c.bf16 %v683_v63, %v682_v61  ;;  %v617_v9 = vmul.f32 %v1221_v5, %v1402_v24  ;;  %v599_v14 = vmul.f32 %v1402_v24, %v503_v10  ;;  %v615_v15 = vmul.f32 %v1402_v24, %v567_v11  ;;  %v1206_v16 = vpop.f32.mrb[14].mxu0  ;;  %v1222_v17 = vpop.f32.mrb[14].mxu1 }
 0x115   : > { %v1079_v12 = vpack.c.bf16 %v665_v2, %v664_v0  ;;  %v1119_v13 = vpack.c.bf16 %v681_v3, %v680_v1  ;;  %1140 = vst [vmem:[%s1430_s20 + $0x28] sm:$0xff] %v1084_v6   ;;  %v638_v18 = vadd.f32 %v1407_v26, %v601_v8  ;;  %v602_v20 = vmul.f32 %v1206_v16, %v1402_v24  ;;  %v506_v22 = vpop.f32.mrb[15].mxu0  ;;  %v570_v23 = vpop.f32.mrb[15].mxu1 }
 0x116   : > { %1148 = vst [vmem:[%s1430_s20 + $0x68] sm:$0xff] %v1124_v7   ;;  %v654_v19 = vadd.f32 %v1407_v26, %v617_v9  ;;  %v618_v21 = vmul.f32 %v1222_v17, %v1402_v24  ;;  %v636_v25 = vadd.f32 %v1407_v26, %v599_v14  ;;  %v652_v27 = vadd.f32 %v1407_v26, %v615_v15 }
 0x117   : > { %1139 = vst [vmem:[%s1430_s20 + $0x20] sm:$0xff] %v1079_v12   ;;  %1147 = vst [vmem:[%s1430_s20 + $0x60] sm:$0xff] %v1119_v13   ;;  %v600_v28 = vmul.f32 %v1402_v24, %v506_v22  ;;  %v616_v29 = vmul.f32 %v1402_v24, %v570_v23  ;;  %v639_v30 = vadd.f32 %v1407_v26, %v602_v20  ;;  %v670_v34 = vmax.f32 %v638_v18, 0.0 }
 0x118   : > { %v655_v31 = vadd.f32 %v1407_v26, %v618_v21  ;;  %v686_v35 = vmax.f32 %v654_v19, 0.0  ;;  %v668_v38 = vmax.f32 %v636_v25, 0.0  ;;  %v684_v39 = vmax.f32 %v652_v27, 0.0 }
 0x119   : > { %v637_v32 = vadd.f32 %v1407_v26, %v600_v28  ;;  %v653_v33 = vadd.f32 %v1407_v26, %v616_v29  ;;  %v671_v36 = vmax.f32 %v639_v30, 0.0 }
 0x11a   : > { %v687_v37 = vmax.f32 %v655_v31, 0.0 }
 0x11b   : > { %v669_v40 = vmax.f32 %v637_v32, 0.0  ;;  %v685_v24 = vmax.f32 %v653_v33, 0.0  ;;  %v1094_v41 = vpack.c.bf16 %v671_v36, %v670_v34 }
 0x11c   : > { %v1134_v42 = vpack.c.bf16 %v687_v37, %v686_v35 }
 0x11d   : > { %v1089_v43 = vpack.c.bf16 %v669_v40, %v668_v38  ;;  %v1129_v44 = vpack.c.bf16 %v685_v24, %v684_v39  ;;  %1142 = vst [vmem:[%s1430_s20 + $0x38] sm:$0xff] %v1094_v41  }
 0x11e   : > { %1150 = vst [vmem:[%s1430_s20 + $0x78] sm:$0xff] %v1134_v42  }
 0x11f   : > { %1141 = vst [vmem:[%s1430_s20 + $0x30] sm:$0xff] %v1089_v43   ;;  %1149 = vst [vmem:[%s1430_s20 + $0x70] sm:$0xff] %v1129_v44  }
 0x120 PF: > { %s13_s14 = sadd.s32 1, %s1309_s14   ;;  %s1509_s12 = smov %s1305_s13 }
 0x121   : > { %p10_p5 = scmp.ge.s32.totalorder %s13_s14, 4   ;;  %s1510_s13 = smov %s1512_s15 }
 0x123   :  { %12 = sbr.rel (!%p10_p5) target bundleno = 2 (0x2), region = 68 }

// kernel: fwd.11
= control target key start
LH: loop header
LB: loop body
LE: loop exit
PB: predicated region body
PF: predicated region fallthrough
CT: control target
= control target key end

     0   :  { %s675_s1 = inlined_call_operand.vmem [shape: bf16[128,128], index: 1, kind: input, shape index: {}]   ;;  %s676_s0 = inlined_call_operand.vmem [shape: bf16[128,128], index: 0, kind: input, shape index: {}]   ;;  %s677_s2 = inlined_call_operand.vmem [shape: f32[8,128], index: 2, kind: input, shape index: {}]   ;;  %s678_s3 = inlined_call_operand.vmem [shape: bf16[128,128], index: 3, kind: output, shape index: {}]  }
   0x1   :  { %v543_v0 = vld [vmem:[%s675_s1] sm:$0xff]   ;;  %v544_v1 = vld [vmem:[%s675_s1 + $0x8] sm:$0xff]   ;;  %v545_v2 = vld [vmem:[%s675_s1 + $0x10] sm:$0xff]  }
   0x2   :  { %495 = vmatprep.subr.bf16.mxu0 %v543_v0  ;;  %527 = vmatprep.subr.bf16.mxu1 %v543_v0  ;;  %v546_v3 = vld [vmem:[%s675_s1 + $0x18] sm:$0xff]   ;;  %v551_v4 = vld [vmem:[%s676_s0] sm:$0xff]   ;;  %v548_v7 = vld [vmem:[%s675_s1 + $0x28] sm:$0xff]  }
   0x3   :  { %496 = vmatpush3.bf16.msra.mxu0 %v543_v0  ;;  %535 = vmatpush3.bf16.msra.mxu1 %v543_v0  ;;  %v552_v5 = vld [vmem:[%s676_s0 + $0x20] sm:$0xff]   ;;  %v549_v8 = vld [vmem:[%s675_s1 + $0x30] sm:$0xff]   ;;  %v550_v9 = vld [vmem:[%s675_s1 + $0x38] sm:$0xff]  }
   0x4   :  { %497 = vmatprep.subr.bf16.mxu0 %v544_v1  ;;  %528 = vmatprep.subr.bf16.mxu1 %v544_v1  ;;  %v547_v6 = vld [vmem:[%s675_s1 + $0x20] sm:$0xff]   ;;  %v553_v10 = vld [vmem:[%s676_s0 + $0x8] sm:$0xff]   ;;  %v555_v12 = vld [vmem:[%s676_s0 + $0x10] sm:$0xff]  }
   0x5   :  { %511 = vmatprep.mubr.bf16.mxu0 %v551_v4  ;;  %519 = vmatprep.mubr.bf16.mxu1 %v552_v5  ;;  %v554_v11 = vld [vmem:[%s676_s0 + $0x28] sm:$0xff]   ;;  %v556_v13 = vld [vmem:[%s676_s0 + $0x30] sm:$0xff]   ;;  %v557_v14 = vld [vmem:[%s676_s0 + $0x18] sm:$0xff]  }
   0x6   :  { %v558_v15 = vld [vmem:[%s676_s0 + $0x38] sm:$0xff]   ;;  %v398_v16 = vld [vmem:[%s677_s2] ss:$0 sm:$0xff]  ;;  %v633_v18 = vld [vmem:[%s677_s2 + $0x1] ss:$0 sm:$0xff] }
   0x7   :  { %498 = vmatpush3.bf16.msra.mxu0 %v544_v1  ;;  %536 = vmatpush3.bf16.msra.mxu1 %v544_v1 }
   0x8   :  { %499 = vmatprep.subr.bf16.mxu0 %v545_v2  ;;  %529 = vmatprep.subr.bf16.mxu1 %v545_v2 }
   0xb   :  { %500 = vmatpush3.bf16.msra.mxu0 %v545_v2  ;;  %537 = vmatpush3.bf16.msra.mxu1 %v545_v2 }
   0xc   :  { %501 = vmatprep.subr.bf16.mxu0 %v546_v3  ;;  %530 = vmatprep.subr.bf16.mxu1 %v546_v3 }
   0xf   :  { %502 = vmatpush3.bf16.msra.mxu0 %v546_v3  ;;  %538 = vmatpush3.bf16.msra.mxu1 %v546_v3 }
  0x10   :  { %503 = vmatprep.subr.bf16.mxu0 %v547_v6  ;;  %531 = vmatprep.subr.bf16.mxu1 %v547_v6 }
  0x13   :  { %504 = vmatpush3.bf16.msra.mxu0 %v547_v6  ;;  %539 = vmatpush3.bf16.msra.mxu1 %v547_v6 }
  0x14   :  { %505 = vmatprep.subr.bf16.mxu0 %v548_v7  ;;  %532 = vmatprep.subr.bf16.mxu1 %v548_v7 }
  0x17   :  { %506 = vmatpush3.bf16.msra.mxu0 %v548_v7  ;;  %540 = vmatpush3.bf16.msra.mxu1 %v548_v7 }
  0x18   :  { %507 = vmatprep.subr.bf16.mxu0 %v549_v8  ;;  %533 = vmatprep.subr.bf16.mxu1 %v549_v8 }
  0x1b   :  { %508 = vmatpush3.bf16.msra.mxu0 %v549_v8  ;;  %541 = vmatpush3.bf16.msra.mxu1 %v549_v8 }
  0x1c   :  { %509 = vmatprep.subr.bf16.mxu0 %v550_v9  ;;  %534 = vmatprep.subr.bf16.mxu1 %v550_v9 }
  0x1f   :  { %510 = vmatpush3.bf16.msra.mxu0 %v550_v9  ;;  %542 = vmatpush3.bf16.msra.mxu1 %v550_v9 }
  0x22   :  { %512 = vmatmul.mubr.bf16.vlgmr.msra.gmra.mrb[0].mxu0 %v553_v10  ;;  %520 = vmatmul.mubr.bf16.vlgmr.msra.gmra.mrb[0].mxu1 %v554_v11 }
  0x23   :  { %515 = vmatprep.mubr.bf16.mxu0 %v555_v12  ;;  %523 = vmatprep.mubr.bf16.mxu1 %v556_v13 }
  0x2a   :  { %516 = vmatmul.mubr.bf16.gmra.mrb[4].mxu0 %v557_v14  ;;  %524 = vmatmul.mubr.bf16.gmra.mrb[4].mxu1 %v558_v15 }
  0xf5   :  { %v513_v17 = vpop.f32.mrb[0].mxu0  ;;  %v521_v19 = vpop.f32.mrb[0].mxu1 }
  0xf6   :  { %v247_v20 = vmul.f32 %v513_v17, %v398_v16  ;;  %v255_v21 = vmul.f32 %v521_v19, %v398_v16  ;;  %v177_v22 = vpop.f32.mrb[1].mxu0  ;;  %v209_v23 = vpop.f32.mrb[1].mxu1 }
  0xf7   :  { %v245_v24 = vmul.f32 %v398_v16, %v177_v22  ;;  %v253_v25 = vmul.f32 %v398_v16, %v209_v23  ;;  %v514_v26 = vpop.f32.mrb[2].mxu0  ;;  %v522_v27 = vpop.f32.mrb[2].mxu1 }
  0xf8   :  { %v268_v28 = vadd.f32 %v633_v18, %v247_v20  ;;  %v276_v29 = vadd.f32 %v633_v18, %v255_v21  ;;  %v248_v30 = vmul.f32 %v514_v26, %v398_v16  ;;  %v256_v31 = vmul.f32 %v522_v27, %v398_v16  ;;  %v180_v32 = vpop.f32.mrb[3].mxu0  ;;  %v212_v33 = vpop.f32.mrb[3].mxu1 }
  0xf9   :  { %v266_v34 = vadd.f32 %v633_v18, %v245_v24  ;;  %v274_v35 = vadd.f32 %v633_v18, %v253_v25  ;;  %v246_v36 = vmul.f32 %v398_v16, %v180_v32  ;;  %v254_v37 = vmul.f32 %v398_v16, %v212_v33 }
  0xfa   :  { %v269_v38 = vadd.f32 %v633_v18, %v248_v30  ;;  %v277_v39 = vadd.f32 %v633_v18, %v256_v31  ;;  %v284_v42 = vmax.f32 %v268_v28, 0.0  ;;  %v292_v43 = vmax.f32 %v276_v29, 0.0 }
  0xfb   :  { %v267_v40 = vadd.f32 %v633_v18, %v246_v36  ;;  %v275_v41 = vadd.f32 %v633_v18, %v254_v37  ;;  %v282_v46 = vmax.f32 %v266_v34, 0.0  ;;  %v290_v47 = vmax.f32 %v274_v35, 0.0 }
  0xfc   :  { %v285_v44 = vmax.f32 %v269_v38, 0.0  ;;  %v293_v45 = vmax.f32 %v277_v39, 0.0 }
  0xfd   :  { %v283_v48 = vmax.f32 %v267_v40, 0.0  ;;  %v291_v49 = vmax.f32 %v275_v41, 0.0  ;;  %v517_v50 = vpop.f32.mrb[4].mxu0  ;;  %v525_v51 = vpop.f32.mrb[4].mxu1 }
  0xfe   :  { %v440_v52 = vpack.c.bf16 %v285_v44, %v284_v42  ;;  %v460_v53 = vpack.c.bf16 %v293_v45, %v292_v43  ;;  %v251_v54 = vmul.f32 %v517_v50, %v398_v16  ;;  %v259_v55 = vmul.f32 %v525_v51, %v398_v16  ;;  %v193_v56 = vpop.f32.mrb[5].mxu0  ;;  %v225_v57 = vpop.f32.mrb[5].mxu1 }
  0xff   :  { %v435_v58 = vpack.c.bf16 %v283_v48, %v282_v46  ;;  %v455_v59 = vpack.c.bf16 %v291_v49, %v290_v47  ;;  %v249_v60 = vmul.f32 %v398_v16, %v193_v56  ;;  %v257_v61 = vmul.f32 %v398_v16, %v225_v57  ;;  %v518_v62 = vpop.f32.mrb[6].mxu0  ;;  %v526_v63 = vpop.f32.mrb[6].mxu1 }
 0x100   :  { %472 = vst [vmem:[%s678_s3 + $0x8] sm:$0xff] %v440_v52   ;;  %476 = vst [vmem:[%s678_s3 + $0x28] sm:$0xff] %v460_v53   ;;  %v272_v0 = vadd.f32 %v633_v18, %v251_v54  ;;  %v280_v1 = vadd.f32 %v633_v18, %v259_v55  ;;  %v252_v2 = vmul.f32 %v518_v62, %v398_v16  ;;  %v196_v4 = vpop.f32.mrb[7].mxu0  ;;  %v228_v5 = vpop.f32.mrb[7].mxu1 }
 0x101   :  { %v260_v3 = vmul.f32 %v526_v63, %v398_v16  ;;  %436 = vst [vmem:[%s678_s3] sm:$0xff] %v435_v58   ;;  %475 = vst [vmem:[%s678_s3 + $0x20] sm:$0xff] %v455_v59   ;;  %v270_v6 = vadd.f32 %v633_v18, %v249_v60  ;;  %v278_v7 = vadd.f32 %v633_v18, %v257_v61 }
 0x102   :  { %v250_v8 = vmul.f32 %v398_v16, %v196_v4  ;;  %v258_v9 = vmul.f32 %v398_v16, %v228_v5  ;;  %v273_v10 = vadd.f32 %v633_v18, %v252_v2  ;;  %v288_v14 = vmax.f32 %v272_v0, 0.0 }
 0x103   :  { %v281_v11 = vadd.f32 %v633_v18, %v260_v3  ;;  %v296_v15 = vmax.f32 %v280_v1, 0.0  ;;  %v286_v20 = vmax.f32 %v270_v6, 0.0  ;;  %v294_v21 = vmax.f32 %v278_v7, 0.0 }
 0x104   :  { %v271_v12 = vadd.f32 %v633_v18, %v250_v8  ;;  %v279_v13 = vadd.f32 %v633_v18, %v258_v9  ;;  %v289_v17 = vmax.f32 %v273_v10, 0.0 }
 0x105   :  { %v297_v19 = vmax.f32 %v281_v11, 0.0 }
 0x106   :  { %v287_v22 = vmax.f32 %v271_v12, 0.0  ;;  %v295_v23 = vmax.f32 %v279_v13, 0.0  ;;  %v450_v24 = vpack.c.bf16 %v289_v17, %v288_v14 }
 0x107   :  { %v470_v25 = vpack.c.bf16 %v297_v19, %v296_v15 }
 0x108   :  { %v445_v26 = vpack.c.bf16 %v287_v22, %v286_v20  ;;  %v465_v16 = vpack.c.bf16 %v295_v23, %v294_v21  ;;  %474 = vst [vmem:[%s678_s3 + $0x18] sm:$0xff] %v450_v24  }
 0x109   :  { %478 = vst [vmem:[%s678_s3 + $0x38] sm:$0xff] %v470_v25  }
 0x10a   :  { %473 = vst [vmem:[%s678_s3 + $0x10] sm:$0xff] %v445_v26   ;;  %477 = vst [vmem:[%s678_s3 + $0x30] sm:$0xff] %v465_v16  }

// kernel: fwd.10
= control target key start
LH: loop header
LB: loop body
LE: loop exit
PB: predicated region body
PF: predicated region fallthrough
CT: control target
= control target key end

     0   :  { %s836_s1 = inlined_call_operand.vmem [shape: bf16[128,128], index: 1, kind: input, shape index: {}]   ;;  %s837_s0 = inlined_call_operand.vmem [shape: bf16[128,128], index: 0, kind: input, shape index: {}]   ;;  %s838_s3 = inlined_call_operand.vmem [shape: bf16[128,128], index: 3, kind: input, shape index: {}]   ;;  %s839_s2 = inlined_call_operand.vmem [shape: f32[8,128], index: 2, kind: input, shape index: {}]   ;;  %s840_s4 = inlined_call_operand.vmem [shape: bf16[128,128], index: 4, kind: output, shape index: {}]  }
   0x1   :  { %v633_v0 = vld [vmem:[%s836_s1] sm:$0xff]   ;;  %v634_v1 = vld [vmem:[%s836_s1 + $0x8] sm:$0xff]   ;;  %v635_v2 = vld [vmem:[%s836_s1 + $0x10] sm:$0xff]  }
   0x2   :  { %585 = vmatprep.subr.bf16.mxu0 %v633_v0  ;;  %617 = vmatprep.subr.bf16.mxu1 %v633_v0  ;;  %v636_v3 = vld [vmem:[%s836_s1 + $0x18] sm:$0xff]   ;;  %v641_v4 = vld [vmem:[%s837_s0] sm:$0xff]   ;;  %v638_v7 = vld [vmem:[%s836_s1 + $0x28] sm:$0xff]  }
   0x3   :  { %586 = vmatpush3.bf16.msra.mxu0 %v633_v0  ;;  %625 = vmatpush3.bf16.msra.mxu1 %v633_v0  ;;  %v642_v5 = vld [vmem:[%s837_s0 + $0x20] sm:$0xff]   ;;  %v639_v8 = vld [vmem:[%s836_s1 + $0x30] sm:$0xff]   ;;  %v640_v9 = vld [vmem:[%s836_s1 + $0x38] sm:$0xff]  }
   0x4   :  { %587 = vmatprep.subr.bf16.mxu0 %v634_v1  ;;  %618 = vmatprep.subr.bf16.mxu1 %v634_v1  ;;  %v637_v6 = vld [vmem:[%s836_s1 + $0x20] sm:$0xff]   ;;  %v643_v10 = vld [vmem:[%s837_s0 + $0x8] sm:$0xff]   ;;  %v645_v12 = vld [vmem:[%s837_s0 + $0x10] sm:$0xff]  }
   0x5   :  { %601 = vmatprep.mubr.bf16.mxu0 %v641_v4  ;;  %609 = vmatprep.mubr.bf16.mxu1 %v642_v5  ;;  %v644_v11 = vld [vmem:[%s837_s0 + $0x28] sm:$0xff]   ;;  %v646_v13 = vld [vmem:[%s837_s0 + $0x30] sm:$0xff]   ;;  %v647_v14 = vld [vmem:[%s837_s0 + $0x18] sm:$0xff]  }
   0x6   :  { %v648_v15 = vld [vmem:[%s837_s0 + $0x38] sm:$0xff]   ;;  %v555_v16 = vld [vmem:[%s838_s3 + $0x8] sm:$0xff]   ;;  %v484_v18 = vld [vmem:[%s838_s3] sm:$0xff]  }
   0x7   :  { %588 = vmatpush3.bf16.msra.mxu0 %v634_v1  ;;  %626 = vmatpush3.bf16.msra.mxu1 %v634_v1  ;;  %v559_v17 = vld [vmem:[%s838_s3 + $0x28] sm:$0xff]   ;;  %v558_v19 = vld [vmem:[%s838_s3 + $0x20] sm:$0xff]   ;;  %v742_v21 = vld [vmem:[%s838_s3 + $0x18] sm:$0xff]   ;;  %v489_v23 = vunpack.c.l.bf16 %v555_v16  ;;  %v485_v25 = vunpack.c.l.bf16 %v484_v18  ;;  %v490_v32 = vunpack.c.h.bf16 %v555_v16  ;;  %v486_v34 = vunpack.c.h.bf16 %v484_v18 }
   0x8   :  { %589 = vmatprep.subr.bf16.mxu0 %v635_v2  ;;  %619 = vmatprep.subr.bf16.mxu1 %v635_v2  ;;  %v737_v20 = vld [vmem:[%s839_s2] ss:$0 sm:$0xff]  ;;  %v747_v22 = vld [vmem:[%s838_s3 + $0x38] sm:$0xff]   ;;  %v505_v24 = vunpack.c.l.bf16 %v559_v17  ;;  %v501_v26 = vunpack.c.l.bf16 %v558_v19  ;;  %v752_v27 = vld [vmem:[%s838_s3 + $0x10] sm:$0xff]   ;;  %v506_v33 = vunpack.c.h.bf16 %v559_v17  ;;  %v502_v35 = vunpack.c.h.bf16 %v558_v19 }
   0x9   :  { %v757_v28 = vld [vmem:[%s838_s3 + $0x30] sm:$0xff]   ;;  %v762_v30 = vld [vmem:[%s839_s2 + $0x1] ss:$0 sm:$0xff]  ;;  %v497_v40 = vunpack.c.l.bf16 %v742_v21  ;;  %v513_v41 = vunpack.c.l.bf16 %v747_v22  ;;  %v493_v46 = vunpack.c.l.bf16 %v752_v27 }
   0xa   :  { %v509_v47 = vunpack.c.l.bf16 %v757_v28 }
   0xb   :  { %590 = vmatpush3.bf16.msra.mxu0 %v635_v2  ;;  %627 = vmatpush3.bf16.msra.mxu1 %v635_v2 }
   0xc   :  { %591 = vmatprep.subr.bf16.mxu0 %v636_v3  ;;  %620 = vmatprep.subr.bf16.mxu1 %v636_v3 }
   0xf   :  { %592 = vmatpush3.bf16.msra.mxu0 %v636_v3  ;;  %628 = vmatpush3.bf16.msra.mxu1 %v636_v3 }
  0x10   :  { %593 = vmatprep.subr.bf16.mxu0 %v637_v6  ;;  %621 = vmatprep.subr.bf16.mxu1 %v637_v6 }
  0x13   :  { %594 = vmatpush3.bf16.msra.mxu0 %v637_v6  ;;  %629 = vmatpush3.bf16.msra.mxu1 %v637_v6 }
  0x14   :  { %595 = vmatprep.subr.bf16.mxu0 %v638_v7  ;;  %622 = vmatprep.subr.bf16.mxu1 %v638_v7 }
  0x17   :  { %596 = vmatpush3.bf16.msra.mxu0 %v638_v7  ;;  %630 = vmatpush3.bf16.msra.mxu1 %v638_v7 }
  0x18   :  { %597 = vmatprep.subr.bf16.mxu0 %v639_v8  ;;  %623 = vmatprep.subr.bf16.mxu1 %v639_v8 }
  0x1b   :  { %598 = vmatpush3.bf16.msra.mxu0 %v639_v8  ;;  %631 = vmatpush3.bf16.msra.mxu1 %v639_v8 }
  0x1c   :  { %599 = vmatprep.subr.bf16.mxu0 %v640_v9  ;;  %624 = vmatprep.subr.bf16.mxu1 %v640_v9 }
  0x1f   :  { %600 = vmatpush3.bf16.msra.mxu0 %v640_v9  ;;  %632 = vmatpush3.bf16.msra.mxu1 %v640_v9 }
  0x22   :  { %602 = vmatmul.mubr.bf16.vlgmr.msra.gmra.mrb[0].mxu0 %v643_v10  ;;  %610 = vmatmul.mubr.bf16.vlgmr.msra.gmra.mrb[0].mxu1 %v644_v11 }
  0x23   :  { %605 = vmatprep.mubr.bf16.mxu0 %v645_v12  ;;  %613 = vmatprep.mubr.bf16.mxu1 %v646_v13 }
  0x2a   :  { %606 = vmatmul.mubr.bf16.gmra.mrb[4].mxu0 %v647_v14  ;;  %614 = vmatmul.mubr.bf16.gmra.mrb[4].mxu1 %v648_v15 }
  0xf5   :  { %v603_v29 = vpop.f32.mrb[0].mxu0  ;;  %v611_v31 = vpop.f32.mrb[0].mxu1 }
  0xf6   :  { %v250_v36 = vmul.f32 %v603_v29, %v737_v20  ;;  %v258_v37 = vmul.f32 %v611_v31, %v737_v20  ;;  %v180_v38 = vpop.f32.mrb[1].mxu0  ;;  %v212_v39 = vpop.f32.mrb[1].mxu1 }
  0xf7   :  { %v248_v42 = vmul.f32 %v737_v20, %v180_v38  ;;  %v256_v43 = vmul.f32 %v737_v20, %v212_v39  ;;  %v604_v44 = vpop.f32.mrb[2].mxu0  ;;  %v612_v45 = vpop.f32.mrb[2].mxu1 }
  0xf8   :  { %v271_v48 = vadd.f32 %v762_v30, %v250_v36  ;;  %v279_v49 = vadd.f32 %v762_v30, %v258_v37  ;;  %v251_v50 = vmul.f32 %v604_v44, %v737_v20  ;;  %v259_v51 = vmul.f32 %v612_v45, %v737_v20  ;;  %v183_v52 = vpop.f32.mrb[3].mxu0  ;;  %v215_v53 = vpop.f32.mrb[3].mxu1 }
  0xf9   :  { %v269_v54 = vadd.f32 %v762_v30, %v248_v42  ;;  %v277_v55 = vadd.f32 %v762_v30, %v256_v43  ;;  %v249_v56 = vmul.f32 %v737_v20, %v183_v52  ;;  %v257_v57 = vmul.f32 %v737_v20, %v215_v53 }
  0xfa   :  { %v319_v58 = vadd.f32 %v489_v23, %v271_v48  ;;  %v327_v59 = vadd.f32 %v505_v24, %v279_v49  ;;  %v272_v60 = vadd.f32 %v762_v30, %v251_v50  ;;  %v280_v61 = vadd.f32 %v762_v30, %v259_v51 }
  0xfb   :  { %v317_v62 = vadd.f32 %v485_v25, %v269_v54  ;;  %v325_v63 = vadd.f32 %v501_v26, %v277_v55  ;;  %v270_v0 = vadd.f32 %v762_v30, %v249_v56  ;;  %v278_v1 = vadd.f32 %v762_v30, %v257_v57 }
  0xfc   :  { %v335_v2 = vmax.f32 %v319_v58, 0.0  ;;  %v343_v3 = vmax.f32 %v327_v59, 0.0  ;;  %v320_v4 = vadd.f32 %v490_v32, %v272_v60  ;;  %v328_v5 = vadd.f32 %v506_v33, %v280_v61 }
  0xfd   :  { %v333_v6 = vmax.f32 %v317_v62, 0.0  ;;  %v341_v7 = vmax.f32 %v325_v63, 0.0  ;;  %v318_v8 = vadd.f32 %v486_v34, %v270_v0  ;;  %v326_v9 = vadd.f32 %v502_v35, %v278_v1  ;;  %v607_v10 = vpop.f32.mrb[4].mxu0  ;;  %v615_v11 = vpop.f32.mrb[4].mxu1 }
  0xfe   :  { %v336_v12 = vmax.f32 %v320_v4, 0.0  ;;  %v344_v13 = vmax.f32 %v328_v5, 0.0  ;;  %v254_v14 = vmul.f32 %v607_v10, %v737_v20  ;;  %v262_v15 = vmul.f32 %v615_v11, %v737_v20  ;;  %v196_v16 = vpop.f32.mrb[5].mxu0  ;;  %v228_v17 = vpop.f32.mrb[5].mxu1 }
  0xff   :  { %v334_v18 = vmax.f32 %v318_v8, 0.0  ;;  %v342_v19 = vmax.f32 %v326_v9, 0.0  ;;  %v252_v23 = vmul.f32 %v737_v20, %v196_v16  ;;  %v260_v24 = vmul.f32 %v737_v20, %v228_v17  ;;  %v608_v25 = vpop.f32.mrb[6].mxu0  ;;  %v616_v26 = vpop.f32.mrb[6].mxu1 }
 0x100   :  { %v523_v29 = vpack.c.bf16 %v336_v12, %v335_v2  ;;  %v543_v31 = vpack.c.bf16 %v344_v13, %v343_v3  ;;  %v275_v32 = vadd.f32 %v762_v30, %v254_v14  ;;  %v283_v33 = vadd.f32 %v762_v30, %v262_v15  ;;  %v199_v34 = vpop.f32.mrb[7].mxu0  ;;  %v231_v35 = vpop.f32.mrb[7].mxu1 }
 0x101   :  { %v518_v36 = vpack.c.bf16 %v334_v18, %v333_v6  ;;  %v538_v37 = vpack.c.bf16 %v342_v19, %v341_v7  ;;  %v273_v38 = vadd.f32 %v762_v30, %v252_v23  ;;  %v281_v39 = vadd.f32 %v762_v30, %v260_v24 }
 0x102   :  { %562 = vst [vmem:[%s840_s4 + $0x8] sm:$0xff] %v523_v29   ;;  %566 = vst [vmem:[%s840_s4 + $0x28] sm:$0xff] %v543_v31   ;;  %v255_v42 = vmul.f32 %v608_v25, %v737_v20  ;;  %v498_v43 = vunpack.c.h.bf16 %v742_v21  ;;  %v263_v44 = vmul.f32 %v616_v26, %v737_v20  ;;  %v514_v45 = vunpack.c.h.bf16 %v747_v22 }
 0x103   :  { %519 = vst [vmem:[%s840_s4] sm:$0xff] %v518_v36   ;;  %565 = vst [vmem:[%s840_s4 + $0x20] sm:$0xff] %v538_v37   ;;  %v253_v48 = vmul.f32 %v737_v20, %v199_v34  ;;  %v494_v49 = vunpack.c.h.bf16 %v752_v27  ;;  %v261_v50 = vmul.f32 %v737_v20, %v231_v35  ;;  %v510_v51 = vunpack.c.h.bf16 %v757_v28 }
 0x104   :  { %v323_v52 = vadd.f32 %v497_v40, %v275_v32  ;;  %v331_v53 = vadd.f32 %v513_v41, %v283_v33  ;;  %v276_v54 = vadd.f32 %v762_v30, %v255_v42  ;;  %v284_v55 = vadd.f32 %v762_v30, %v263_v44 }
 0x105   :  { %v321_v56 = vadd.f32 %v493_v46, %v273_v38  ;;  %v329_v57 = vadd.f32 %v509_v47, %v281_v39  ;;  %v274_v20 = vadd.f32 %v762_v30, %v253_v48  ;;  %v282_v58 = vadd.f32 %v762_v30, %v261_v50 }
 0x106   :  { %v324_v59 = vadd.f32 %v498_v43, %v276_v54  ;;  %v332_v21 = vadd.f32 %v514_v45, %v284_v55  ;;  %v339_v22 = vmax.f32 %v323_v52, 0.0  ;;  %v347_v41 = vmax.f32 %v331_v53, 0.0 }
 0x107   :  { %v322_v40 = vadd.f32 %v494_v49, %v274_v20  ;;  %v330_v60 = vadd.f32 %v510_v51, %v282_v58  ;;  %v337_v63 = vmax.f32 %v321_v56, 0.0  ;;  %v345_v0 = vmax.f32 %v329_v57, 0.0 }
 0x108   :  { %v340_v61 = vmax.f32 %v324_v59, 0.0  ;;  %v348_v62 = vmax.f32 %v332_v21, 0.0 }
 0x109   :  { %v338_v1 = vmax.f32 %v322_v40, 0.0  ;;  %v346_v27 = vmax.f32 %v330_v60, 0.0 }
 0x10a   :  { %v533_v46 = vpack.c.bf16 %v340_v61, %v339_v22  ;;  %v553_v2 = vpack.c.bf16 %v348_v62, %v347_v41 }
 0x10b   :  { %v528_v28 = vpack.c.bf16 %v338_v1, %v337_v63  ;;  %v548_v47 = vpack.c.bf16 %v346_v27, %v345_v0 }
 0x10c   :  { %564 = vst [vmem:[%s840_s4 + $0x18] sm:$0xff] %v533_v46   ;;  %568 = vst [vmem:[%s840_s4 + $0x38] sm:$0xff] %v553_v2  }
 0x10d   :  { %563 = vst [vmem:[%s840_s4 + $0x10] sm:$0xff] %v528_v28   ;;  %567 = vst [vmem:[%s840_s4 + $0x30] sm:$0xff] %v548_v47  }

// kernel: fwd.8
= control target key start
LH: loop header
LB: loop body
LE: loop exit
PB: predicated region body
PF: predicated region fallthrough
CT: control target
= control target key end

     0   :  { %s2989_s1 = inlined_call_operand.vmem [shape: bf16[1152,128], index: 1, kind: input, shape index: {}]   ;;  %s2990_s0 = inlined_call_operand.vmem [shape: bf16[128,1152], index: 0, kind: input, shape index: {}]   ;;  %s2991_s2 = inlined_call_operand.vmem [shape: f32[8,128], index: 2, kind: input, shape index: {}]   ;;  %s2992_s3 = inlined_call_operand.vmem [shape: bf16[128,128], index: 3, kind: output, shape index: {}]  }
   0x1   :  { %v2211_v0 = vld [vmem:[%s2989_s1 + $0x40] sm:$0xff]   ;;  %v2215_v4 = vld [vmem:[%s2989_s1 + $0x48] sm:$0xff]   ;;  %v2219_v8 = vld [vmem:[%s2989_s1 + $0x50] sm:$0xff]  }
   0x2   :  { %v2212_v1 = vld [vmem:[%s2989_s1 + $0xc0] sm:$0xff]   ;;  %1891 = vmatprep.subr.bf16.mxu0 %v2211_v0  ;;  %v2216_v5 = vld [vmem:[%s2989_s1 + $0xc8] sm:$0xff]   ;;  %v2220_v9 = vld [vmem:[%s2989_s1 + $0xd0] sm:$0xff]  }
   0x3   :  { %v2213_v2 = vld [vmem:[%s2989_s1] sm:$0xff]   ;;  %1955 = vmatprep.subr.bf16.mxu1 %v2212_v1  ;;  %v2217_v6 = vld [vmem:[%s2989_s1 + $0x8] sm:$0xff]   ;;  %v2221_v10 = vld [vmem:[%s2989_s1 + $0x10] sm:$0xff]  }
   0x4   :  { %v2214_v3 = vld [vmem:[%s2989_s1 + $0x80] sm:$0xff]   ;;  %1892 = vmatpush3.bf16.msra.mxu0 %v2213_v2  ;;  %v2218_v7 = vld [vmem:[%s2989_s1 + $0x88] sm:$0xff]   ;;  %v2222_v11 = vld [vmem:[%s2989_s1 + $0x90] sm:$0xff]  }
   0x5   :  { %1956 = vmatpush3.bf16.msra.mxu1 %v2214_v3  ;;  %1893 = vmatprep.subr.bf16.mxu0 %v2215_v4  ;;  %v2223_v12 = vld [vmem:[%s2989_s1 + $0x58] sm:$0xff]   ;;  %v2227_v16 = vld [vmem:[%s2989_s1 + $0x60] sm:$0xff]   ;;  %v2231_v20 = vld [vmem:[%s2989_s1 + $0x68] sm:$0xff]  }
   0x6   :  { %1957 = vmatprep.subr.bf16.mxu1 %v2216_v5  ;;  %v2224_v13 = vld [vmem:[%s2989_s1 + $0xd8] sm:$0xff]   ;;  %v2228_v17 = vld [vmem:[%s2989_s1 + $0xe0] sm:$0xff]   ;;  %v2232_v21 = vld [vmem:[%s2989_s1 + $0xe8] sm:$0xff]  }
   0x7   :  { %v2225_v14 = vld [vmem:[%s2989_s1 + $0x18] sm:$0xff]   ;;  %v2229_v18 = vld [vmem:[%s2989_s1 + $0x20] sm:$0xff]   ;;  %v2233_v22 = vld [vmem:[%s2989_s1 + $0x28] sm:$0xff]  }
   0x8   :  { %1894 = vmatpush3.bf16.msra.mxu0 %v2217_v6  ;;  %v2226_v15 = vld [vmem:[%s2989_s1 + $0x98] sm:$0xff]   ;;  %v2230_v19 = vld [vmem:[%s2989_s1 + $0xa0] sm:$0xff]   ;;  %v2234_v23 = vld [vmem:[%s2989_s1 + $0xa8] sm:$0xff]  }
   0x9   :  { %1958 = vmatpush3.bf16.msra.mxu1 %v2218_v7  ;;  %1895 = vmatprep.subr.bf16.mxu0 %v2219_v8  ;;  %v2235_v24 = vld [vmem:[%s2989_s1 + $0x70] sm:$0xff]   ;;  %v2239_v28 = vld [vmem:[%s2989_s1 + $0x78] sm:$0xff]   ;;  %v2243_v32 = vld [vmem:[%s2990_s0] ss:$36 sps:$4 sm:$0xff]  }
   0xa   :  { %1959 = vmatprep.subr.bf16.mxu1 %v2220_v9  ;;  %v2236_v25 = vld [vmem:[%s2989_s1 + $0xf0] sm:$0xff]   ;;  %v2240_v29 = vld [vmem:[%s2989_s1 + $0xf8] sm:$0xff]   ;;  %v2245_v33 = vld [vmem:[%s2990_s0 + $0x4] ss:$36 sps:$4 sm:$0xff]  }
   0xb   :  { %v2237_v26 = vld [vmem:[%s2989_s1 + $0x30] sm:$0xff]   ;;  %v2241_v30 = vld [vmem:[%s2989_s1 + $0x38] sm:$0xff]   ;;  %v2246_v34 = vld [vmem:[%s2990_s0 + $0x8] ss:$36 sps:$4 sm:$0xff]   ;;  %1071 = vmatprep.mubr.bf16.mxu0 %v2245_v33 }
   0xc   :  { %1896 = vmatpush3.bf16.msra.mxu0 %v2221_v10  ;;  %v2238_v27 = vld [vmem:[%s2989_s1 + $0xb0] sm:$0xff]   ;;  %v2242_v31 = vld [vmem:[%s2989_s1 + $0xb8] sm:$0xff]   ;;  %v2249_v36 = vld [vmem:[%s2989_s1 + $0x140] sm:$0xff]  }
   0xd   :  { %1960 = vmatpush3.bf16.msra.mxu1 %v2222_v11  ;;  %1897 = vmatprep.subr.bf16.mxu0 %v2223_v12  ;;  %v2248_v35 = vld [vmem:[%s2990_s0 + $0xc] ss:$36 sps:$4 sm:$0xff]   ;;  %v2250_v37 = vld [vmem:[%s2989_s1 + $0x1c0] sm:$0xff]   ;;  %v2255_v41 = vld [vmem:[%s2990_s0 + $0x54] ss:$36 sps:$4 sm:$0xff]  }
   0xe   :  { %1961 = vmatprep.subr.bf16.mxu1 %v2224_v13  ;;  %1168 = vmatprep.mubr.bf16.mxu1 %v2248_v35  ;;  %v2251_v38 = vld [vmem:[%s2989_s1 + $0x100] sm:$0xff]   ;;  %v2253_v40 = vld [vmem:[%s2990_s0 + $0x4c] ss:$36 sps:$4 sm:$0xff]   ;;  %v2263_v48 = vld [vmem:[%s2990_s0 + $0x94] ss:$36 sps:$4 sm:$0xff]  }
   0xf   :  { %v2252_v39 = vld [vmem:[%s2989_s1 + $0x180] sm:$0xff]   ;;  %v2257_v42 = vld [vmem:[%s2990_s0 + $0x48] ss:$36 sps:$4 sm:$0xff]   ;;  %v2258_v43 = vld [vmem:[%s2990_s0 + $0x50] ss:$36 sps:$4 sm:$0xff]  }
  0x10   :  { %1898 = vmatpush3.bf16.msra.mxu0 %v2225_v14  ;;  %v2259_v44 = vld [vmem:[%s2989_s1 + $0x148] sm:$0xff]   ;;  %v2265_v49 = vld [vmem:[%s2990_s0 + $0x9c] ss:$36 sps:$4 sm:$0xff]   ;;  %v2267_v50 = vld [vmem:[%s2990_s0 + $0x90] ss:$36 sps:$4 sm:$0xff]  }
  0x11   :  { %1962 = vmatpush3.bf16.msra.mxu1 %v2226_v15  ;;  %1899 = vmatprep.subr.bf16.mxu0 %v2227_v16  ;;  %v2260_v45 = vld [vmem:[%s2989_s1 + $0x1c8] sm:$0xff]   ;;  %v2268_v51 = vld [vmem:[%s2990_s0 + $0x98] ss:$36 sps:$4 sm:$0xff]   ;;  %v2269_v52 = vld [vmem:[%s2989_s1 + $0x150] sm:$0xff]  }
  0x12   :  { %1963 = vmatprep.subr.bf16.mxu1 %v2228_v17  ;;  %v2261_v46 = vld [vmem:[%s2989_s1 + $0x108] sm:$0xff]   ;;  %v2270_v53 = vld [vmem:[%s2989_s1 + $0x1d0] sm:$0xff]   ;;  %v2273_v56 = vld [vmem:[%s2990_s0 + $0xdc] ss:$36 sps:$4 sm:$0xff]  }
  0x13   :  { %v2262_v47 = vld [vmem:[%s2989_s1 + $0x188] sm:$0xff]   ;;  %v2271_v54 = vld [vmem:[%s2989_s1 + $0x110] sm:$0xff]   ;;  %v2277_v58 = vld [vmem:[%s2990_s0 + $0xd8] ss:$36 sps:$4 sm:$0xff]  }
  0x14   :  { %1900 = vmatpush3.bf16.msra.mxu0 %v2229_v18  ;;  %v2272_v55 = vld [vmem:[%s2989_s1 + $0x190] sm:$0xff]   ;;  %v2275_v57 = vld [vmem:[%s2990_s0 + $0xe4] ss:$36 sps:$4 sm:$0xff]   ;;  %v2279_v60 = vld [vmem:[%s2989_s1 + $0x158] sm:$0xff]  }
  0x15   :  { %1964 = vmatpush3.bf16.msra.mxu1 %v2230_v19  ;;  %1901 = vmatprep.subr.bf16.mxu0 %v2231_v20  ;;  %v2278_v59 = vld [vmem:[%s2990_s0 + $0xe0] ss:$36 sps:$4 sm:$0xff]   ;;  %v2280_v61 = vld [vmem:[%s2989_s1 + $0x1d8] sm:$0xff]   ;;  %v2285_v1 = vld [vmem:[%s2990_s0 + $0x12c] ss:$36 sps:$4 sm:$0xff]  }
  0x16   :  { %1965 = vmatprep.subr.bf16.mxu1 %v2232_v21  ;;  %v2281_v62 = vld [vmem:[%s2989_s1 + $0x118] sm:$0xff]   ;;  %v2283_v0 = vld [vmem:[%s2990_s0 + $0x124] ss:$36 sps:$4 sm:$0xff]   ;;  %v2293_v8 = vld [vmem:[%s2990_s0 + $0x16c] ss:$36 sps:$4 sm:$0xff]  }
  0x17   :  { %v2282_v63 = vld [vmem:[%s2989_s1 + $0x198] sm:$0xff]   ;;  %v2287_v2 = vld [vmem:[%s2990_s0 + $0x120] ss:$36 sps:$4 sm:$0xff]   ;;  %v2288_v4 = vld [vmem:[%s2990_s0 + $0x128] ss:$36 sps:$4 sm:$0xff]  }
  0x18   :  { %1902 = vmatpush3.bf16.msra.mxu0 %v2233_v22  ;;  %v2289_v3 = vld [vmem:[%s2989_s1 + $0x160] sm:$0xff]   ;;  %v2295_v9 = vld [vmem:[%s2990_s0 + $0x174] ss:$36 sps:$4 sm:$0xff]   ;;  %v2299_v10 = vld [vmem:[%s2989_s1 + $0x168] sm:$0xff]  }
  0x19   :  { %1966 = vmatpush3.bf16.msra.mxu1 %v2234_v23  ;;  %1903 = vmatprep.subr.bf16.mxu0 %v2235_v24  ;;  %v2290_v5 = vld [vmem:[%s2989_s1 + $0x1e0] sm:$0xff]   ;;  %v2300_v11 = vld [vmem:[%s2989_s1 + $0x1e8] sm:$0xff]   ;;  %v2298_v15 = vld [vmem:[%s2990_s0 + $0x170] ss:$36 sps:$4 sm:$0xff]  }
  0x1a   :  { %1967 = vmatprep.subr.bf16.mxu1 %v2236_v25  ;;  %v2291_v6 = vld [vmem:[%s2989_s1 + $0x120] sm:$0xff]   ;;  %v2297_v12 = vld [vmem:[%s2990_s0 + $0x168] ss:$36 sps:$4 sm:$0xff]   ;;  %v2303_v16 = vld [vmem:[%s2990_s0 + $0x1b4] ss:$36 sps:$4 sm:$0xff]  }
  0x1b   :  { %v2292_v7 = vld [vmem:[%s2989_s1 + $0x1a0] sm:$0xff]   ;;  %v2301_v13 = vld [vmem:[%s2989_s1 + $0x128] sm:$0xff]   ;;  %v2309_v18 = vld [vmem:[%s2989_s1 + $0x170] sm:$0xff]  }
  0x1c   :  { %1904 = vmatpush3.bf16.msra.mxu0 %v2237_v26  ;;  %v2302_v14 = vld [vmem:[%s2989_s1 + $0x1a8] sm:$0xff]   ;;  %v2305_v17 = vld [vmem:[%s2990_s0 + $0x1bc] ss:$36 sps:$4 sm:$0xff]   ;;  %v2310_v19 = vld [vmem:[%s2989_s1 + $0x1f0] sm:$0xff]  }
  0x1d   :  { %1968 = vmatpush3.bf16.msra.mxu1 %v2238_v27  ;;  %1905 = vmatprep.subr.bf16.mxu0 %v2239_v28  ;;  %v2311_v20 = vld [vmem:[%s2989_s1 + $0x130] sm:$0xff]   ;;  %v2308_v23 = vld [vmem:[%s2990_s0 + $0x1b8] ss:$36 sps:$4 sm:$0xff]   ;;  %v2315_v25 = vld [vmem:[%s2990_s0 + $0x204] ss:$36 sps:$4 sm:$0xff]  }
  0x1e   :  { %1969 = vmatprep.subr.bf16.mxu1 %v2240_v29  ;;  %v2312_v21 = vld [vmem:[%s2989_s1 + $0x1b0] sm:$0xff]   ;;  %v2313_v24 = vld [vmem:[%s2990_s0 + $0x1fc] ss:$36 sps:$4 sm:$0xff]  }
  0x1f   :  { %v2307_v22 = vld [vmem:[%s2990_s0 + $0x1b0] ss:$36 sps:$4 sm:$0xff]   ;;  %v2319_v26 = vld [vmem:[%s2989_s1 + $0x178] sm:$0xff]  }
  0x20   :  { %1906 = vmatpush3.bf16.msra.mxu0 %v2241_v30  ;;  %v2320_v27 = vld [vmem:[%s2989_s1 + $0x1f8] sm:$0xff]   ;;  %v2323_v35 = vld [vmem:[%s2990_s0 + $0x10] ss:$36 sps:$4 sm:$0xff]  }
  0x21   :  { %1970 = vmatpush3.bf16.msra.mxu1 %v2242_v31  ;;  %2019 = vmatprep.subr.bf16.mxu0 %v2249_v36  ;;  %v2321_v28 = vld [vmem:[%s2989_s1 + $0x138] sm:$0xff]   ;;  %v2318_v31 = vld [vmem:[%s2990_s0 + $0x200] ss:$36 sps:$4 sm:$0xff]  }
  0x22   :  { %2083 = vmatprep.subr.bf16.mxu1 %v2250_v37  ;;  %v2322_v29 = vld [vmem:[%s2989_s1 + $0x1b8] sm:$0xff]  }
  0x23   :  { %1072 = vmatmul.mubr.bf16.vlgmr.msra.gmra.mrb[0].mxu0 %v2243_v32  ;;  %v2317_v30 = vld [vmem:[%s2990_s0 + $0x1f8] ss:$36 sps:$4 sm:$0xff]   ;;  %v2329_v32 = vld [vmem:[%s2989_s1 + $0x200] sm:$0xff]  }
  0x24   :  { %1169 = vmatmul.mubr.bf16.vlgmr.msra.gmra.mrb[0].mxu1 %v2246_v34  ;;  %2020 = vmatpush3.bf16.msra.mxu0 %v2251_v38  ;;  %v2325_v33 = vld [vmem:[%s2990_s0 + $0x14] ss:$36 sps:$4 sm:$0xff]   ;;  %v2328_v34 = vld [vmem:[%s2990_s0 + $0x1c] ss:$36 sps:$4 sm:$0xff]   ;;  %v2332_v38 = vld [vmem:[%s2990_s0 + $0x64] ss:$36 sps:$4 sm:$0xff]  }
  0x25   :  { %2084 = vmatpush3.bf16.msra.mxu1 %v2252_v39  ;;  %1079 = vmatprep.mubr.bf16.mxu0 %v2253_v40  ;;  %v2326_v36 = vld [vmem:[%s2990_s0 + $0x18] ss:$36 sps:$4 sm:$0xff]   ;;  %v2336_v39 = vld [vmem:[%s2989_s1 + $0x208] sm:$0xff]   ;;  %v2343_v40 = vld [vmem:[%s2989_s1 + $0x210] sm:$0xff]  }
  0x26   :  { %1176 = vmatprep.mubr.bf16.mxu1 %v2255_v41  ;;  %2021 = vmatprep.subr.bf16.mxu0 %v2259_v44  ;;  %v2330_v37 = vld [vmem:[%s2990_s0 + $0x5c] ss:$36 sps:$4 sm:$0xff]   ;;  %v2339_v44 = vld [vmem:[%s2990_s0 + $0xac] ss:$36 sps:$4 sm:$0xff]  }
  0x27   :  { %2085 = vmatprep.subr.bf16.mxu1 %v2260_v45  ;;  %v2334_v41 = vld [vmem:[%s2990_s0 + $0x58] ss:$36 sps:$4 sm:$0xff]  }
  0x28   :  { %2022 = vmatpush3.bf16.msra.mxu0 %v2261_v46  ;;  %v2350_v45 = vld [vmem:[%s2989_s1 + $0x218] sm:$0xff]   ;;  %v2357_v46 = vld [vmem:[%s2989_s1 + $0x220] sm:$0xff]  }
  0x29   :  { %2086 = vmatpush3.bf16.msra.mxu1 %v2262_v47  ;;  %2023 = vmatprep.subr.bf16.mxu0 %v2269_v52  ;;  %v2341_v47 = vld [vmem:[%s2990_s0 + $0xa0] ss:$36 sps:$4 sm:$0xff]   ;;  %v2348_v52 = vld [vmem:[%s2990_s0 + $0xe8] ss:$36 sps:$4 sm:$0xff]  }
  0x2a   :  { %2087 = vmatprep.subr.bf16.mxu1 %v2270_v53  ;;  %v2371_v53 = vld [vmem:[%s2989_s1 + $0x230] sm:$0xff]  }
  0x2b   :  { %1080 = vmatmul.mubr.bf16.gmra.mrb[4].mxu0 %v2257_v42  ;;  %v2335_v42 = vld [vmem:[%s2990_s0 + $0x60] ss:$36 sps:$4 sm:$0xff]  }
  0x2c   :  { %1177 = vmatmul.mubr.bf16.gmra.mrb[4].mxu1 %v2258_v43  ;;  %1087 = vmatprep.mubr.bf16.mxu0 %v2263_v48  ;;  %v2337_v43 = vld [vmem:[%s2990_s0 + $0xa4] ss:$36 sps:$4 sm:$0xff]  }
  0x2d   :  { %1184 = vmatprep.mubr.bf16.mxu1 %v2265_v49  ;;  %2024 = vmatpush3.bf16.msra.mxu0 %v2271_v54  ;;  %v2342_v48 = vld [vmem:[%s2990_s0 + $0xa8] ss:$36 sps:$4 sm:$0xff]   ;;  %v2349_v54 = vld [vmem:[%s2990_s0 + $0xf0] ss:$36 sps:$4 sm:$0xff]  }
  0x2e   :  { %2088 = vmatpush3.bf16.msra.mxu1 %v2272_v55  ;;  %2025 = vmatprep.subr.bf16.mxu0 %v2279_v60  ;;  %v2344_v49 = vld [vmem:[%s2990_s0 + $0xec] ss:$36 sps:$4 sm:$0xff]   ;;  %v2351_v55 = vld [vmem:[%s2990_s0 + $0x134] ss:$36 sps:$4 sm:$0xff]   ;;  %v2358_v60 = vld [vmem:[%s2990_s0 + $0x17c] ss:$36 sps:$4 sm:$0xff]  }
  0x2f   :  { %2089 = vmatprep.subr.bf16.mxu1 %v2280_v61  ;;  %v2360_v61 = vld [vmem:[%s2990_s0 + $0x184] ss:$36 sps:$4 sm:$0xff]  }
  0x31   :  { %2026 = vmatpush3.bf16.msra.mxu0 %v2281_v62  ;;  %v2362_v62 = vld [vmem:[%s2990_s0 + $0x178] ss:$36 sps:$4 sm:$0xff]  }
  0x32   :  { %2090 = vmatpush3.bf16.msra.mxu1 %v2282_v63  ;;  %2027 = vmatprep.subr.bf16.mxu0 %v2289_v3  ;;  %v2363_v63 = vld [vmem:[%s2990_s0 + $0x180] ss:$36 sps:$4 sm:$0xff]   ;;  %v2370_v3 = vld [vmem:[%s2990_s0 + $0x1c8] ss:$36 sps:$4 sm:$0xff]  }
  0x33   :  { %1088 = vmatmul.mubr.bf16.gmra.mrb[8].mxu0 %v2267_v50  ;;  %2091 = vmatprep.subr.bf16.mxu1 %v2290_v5  ;;  %v2346_v50 = vld [vmem:[%s2990_s0 + $0xf4] ss:$36 sps:$4 sm:$0xff]  }
  0x34   :  { %1185 = vmatmul.mubr.bf16.gmra.mrb[8].mxu1 %v2268_v51  ;;  %1095 = vmatprep.mubr.bf16.mxu0 %v2273_v56  ;;  %v2364_v51 = vld [vmem:[%s2989_s1 + $0x228] sm:$0xff]   ;;  %v2353_v56 = vld [vmem:[%s2990_s0 + $0x13c] ss:$36 sps:$4 sm:$0xff]   ;;  %v2374_v5 = vld [vmem:[%s2990_s0 + $0x214] ss:$36 sps:$4 sm:$0xff]  }
  0x35   :  { %1192 = vmatprep.mubr.bf16.mxu1 %v2275_v57  ;;  %2028 = vmatpush3.bf16.msra.mxu0 %v2291_v6  ;;  %v2378_v57 = vld [vmem:[%s2989_s1 + $0x238] sm:$0xff]   ;;  %v2376_v6 = vld [vmem:[%s2990_s0 + $0x208] ss:$36 sps:$4 sm:$0xff]  }
  0x36   :  { %2092 = vmatpush3.bf16.msra.mxu1 %v2292_v7  ;;  %2029 = vmatprep.subr.bf16.mxu0 %v2299_v10  ;;  %v2377_v7 = vld [vmem:[%s2990_s0 + $0x210] ss:$36 sps:$4 sm:$0xff]   ;;  %v2381_v10 = vld [vmem:[%s2990_s0 + $0x68] ss:$36 sps:$4 sm:$0xff]  }
  0x37   :  { %2093 = vmatprep.subr.bf16.mxu1 %v2300_v11  ;;  %v2382_v11 = vld [vmem:[%s2990_s0 + $0x188] ss:$36 sps:$4 sm:$0xff]  }
  0x39   :  { %2030 = vmatpush3.bf16.msra.mxu0 %v2301_v13  ;;  %v2384_v13 = vld [vmem:[%s2990_s0 + $0x1d0] ss:$36 sps:$4 sm:$0xff]  }
  0x3a   :  { %2094 = vmatpush3.bf16.msra.mxu1 %v2302_v14  ;;  %2031 = vmatprep.subr.bf16.mxu0 %v2309_v18  ;;  %v2385_v14 = vld [vmem:[%s2990_s0 + $0xf8] ss:$36 sps:$4 sm:$0xff]  }
  0x3b   :  { %1096 = vmatmul.mubr.bf16.gmra.mrb[12].mxu0 %v2277_v58  ;;  %2095 = vmatprep.subr.bf16.mxu1 %v2310_v19  ;;  %v2355_v58 = vld [vmem:[%s2990_s0 + $0x130] ss:$36 sps:$4 sm:$0xff]  }
  0x3c   :  { %1193 = vmatmul.mubr.bf16.gmra.mrb[12].mxu1 %v2278_v59  ;;  %1103 = vmatprep.mubr.bf16.mxu0 %v2283_v0  ;;  %v2356_v59 = vld [vmem:[%s2990_s0 + $0x138] ss:$36 sps:$4 sm:$0xff]   ;;  %v2365_v0 = vld [vmem:[%s2990_s0 + $0x1c4] ss:$36 sps:$4 sm:$0xff]  }
  0x3d   :  { %1200 = vmatprep.mubr.bf16.mxu1 %v2285_v1  ;;  %2032 = vmatpush3.bf16.msra.mxu0 %v2311_v20  ;;  %v2367_v1 = vld [vmem:[%s2990_s0 + $0x1cc] ss:$36 sps:$4 sm:$0xff]  }
  0x3e   :  { %2096 = vmatpush3.bf16.msra.mxu1 %v2312_v21  ;;  %2033 = vmatprep.subr.bf16.mxu0 %v2319_v26 }
  0x3f   :  { %2097 = vmatprep.subr.bf16.mxu1 %v2320_v27 }
  0x41   :  { %2034 = vmatpush3.bf16.msra.mxu0 %v2321_v28 }
  0x42   :  { %2098 = vmatpush3.bf16.msra.mxu1 %v2322_v29  ;;  %2163 = vmatprep.subr.bf16.mxu0 %v2329_v32 }
  0x43   :  { %1104 = vmatmul.mubr.bf16.gmra.mrb[16].mxu0 %v2287_v2  ;;  %2195 = vmatprep.subr.bf16.mxu1 %v2329_v32  ;;  %v2369_v2 = vld [vmem:[%s2990_s0 + $0x1c0] ss:$36 sps:$4 sm:$0xff]  }
  0x44   :  { %1201 = vmatmul.mubr.bf16.gmra.mrb[16].mxu1 %v2288_v4  ;;  %1111 = vmatprep.mubr.bf16.mxu0 %v2293_v8  ;;  %v2372_v4 = vld [vmem:[%s2990_s0 + $0x20c] ss:$36 sps:$4 sm:$0xff]   ;;  %v2379_v8 = vld [vmem:[%s2990_s0 + $0x20] ss:$36 sps:$4 sm:$0xff]  }
  0x45   :  { %1208 = vmatprep.mubr.bf16.mxu1 %v2295_v9  ;;  %v2380_v9 = vld [vmem:[%s2990_s0 + $0x140] ss:$36 sps:$4 sm:$0xff]  }
  0x4b   :  { %1112 = vmatmul.mubr.bf16.gmra.mrb[20].mxu0 %v2297_v12  ;;  %v2383_v12 = vld [vmem:[%s2990_s0 + $0xb0] ss:$36 sps:$4 sm:$0xff]  }
  0x4c   :  { %1209 = vmatmul.mubr.bf16.gmra.mrb[20].mxu1 %v2298_v15  ;;  %1119 = vmatprep.mubr.bf16.mxu0 %v2303_v16  ;;  %v2386_v15 = vld [vmem:[%s2990_s0 + $0x218] ss:$36 sps:$4 sm:$0xff]  }
  0x4d   :  { %1216 = vmatprep.mubr.bf16.mxu1 %v2305_v17 }
  0x53   :  { %1120 = vmatmul.mubr.bf16.gmra.mrb[24].mxu0 %v2307_v22 }
  0x54   :  { %1217 = vmatmul.mubr.bf16.gmra.mrb[24].mxu1 %v2308_v23  ;;  %1127 = vmatprep.mubr.bf16.mxu0 %v2313_v24 }
  0x55   :  { %1224 = vmatprep.mubr.bf16.mxu1 %v2315_v25 }
  0x5b   :  { %1128 = vmatmul.mubr.bf16.gmra.mrb[28].mxu0 %v2317_v30 }
  0x5c   :  { %1225 = vmatmul.mubr.bf16.gmra.mrb[28].mxu1 %v2318_v31  ;;  %1265 = vmatprep.mubr.bf16.mxu0 %v2325_v33 }
  0x5d   :  { %1362 = vmatprep.mubr.bf16.mxu1 %v2328_v34 }
  0x63   :  { %1266 = vmatmul.mubr.bf16.vlgmr.msra.gmra.mrb[32].mxu0 %v2323_v35 }
  0x64   :  { %1363 = vmatmul.mubr.bf16.vlgmr.msra.gmra.mrb[32].mxu1 %v2326_v36  ;;  %2164 = vmatpush3.bf16.msra.mxu0 %v2329_v32 }
  0x65   :  { %2203 = vmatpush3.bf16.msra.mxu1 %v2329_v32  ;;  %1273 = vmatprep.mubr.bf16.mxu0 %v2330_v37 }
  0x66   :  { %1370 = vmatprep.mubr.bf16.mxu1 %v2332_v38  ;;  %2165 = vmatprep.subr.bf16.mxu0 %v2336_v39 }
  0x67   :  { %2196 = vmatprep.subr.bf16.mxu1 %v2336_v39 }
  0x68   :  { %2166 = vmatpush3.bf16.msra.mxu0 %v2336_v39 }
  0x69   :  { %2204 = vmatpush3.bf16.msra.mxu1 %v2336_v39  ;;  %2167 = vmatprep.subr.bf16.mxu0 %v2343_v40 }
  0x6a   :  { %2197 = vmatprep.subr.bf16.mxu1 %v2343_v40 }
  0x6b   :  { %1274 = vmatmul.mubr.bf16.gmra.mrb[36].mxu0 %v2334_v41 }
  0x6c   :  { %1371 = vmatmul.mubr.bf16.gmra.mrb[36].mxu1 %v2335_v42  ;;  %1281 = vmatprep.mubr.bf16.mxu0 %v2337_v43 }
  0x6d   :  { %1378 = vmatprep.mubr.bf16.mxu1 %v2339_v44  ;;  %2168 = vmatpush3.bf16.msra.mxu0 %v2343_v40 }
  0x6e   :  { %2205 = vmatpush3.bf16.msra.mxu1 %v2343_v40  ;;  %2169 = vmatprep.subr.bf16.mxu0 %v2350_v45 }
  0x6f   :  { %2198 = vmatprep.subr.bf16.mxu1 %v2350_v45 }
  0x71   :  { %2170 = vmatpush3.bf16.msra.mxu0 %v2350_v45 }
  0x72   :  { %2206 = vmatpush3.bf16.msra.mxu1 %v2350_v45  ;;  %2171 = vmatprep.subr.bf16.mxu0 %v2357_v46 }
  0x73   :  { %1282 = vmatmul.mubr.bf16.gmra.mrb[40].mxu0 %v2341_v47  ;;  %2199 = vmatprep.subr.bf16.mxu1 %v2357_v46 }
  0x74   :  { %1379 = vmatmul.mubr.bf16.gmra.mrb[40].mxu1 %v2342_v48  ;;  %1289 = vmatprep.mubr.bf16.mxu0 %v2344_v49 }
  0x75   :  { %1386 = vmatprep.mubr.bf16.mxu1 %v2346_v50  ;;  %2172 = vmatpush3.bf16.msra.mxu0 %v2357_v46 }
  0x76   :  { %2207 = vmatpush3.bf16.msra.mxu1 %v2357_v46  ;;  %2173 = vmatprep.subr.bf16.mxu0 %v2364_v51 }
  0x77   :  { %2200 = vmatprep.subr.bf16.mxu1 %v2364_v51 }
  0x79   :  { %2174 = vmatpush3.bf16.msra.mxu0 %v2364_v51 }
  0x7a   :  { %2208 = vmatpush3.bf16.msra.mxu1 %v2364_v51  ;;  %2175 = vmatprep.subr.bf16.mxu0 %v2371_v53 }
  0x7b   :  { %1290 = vmatmul.mubr.bf16.gmra.mrb[44].mxu0 %v2348_v52  ;;  %2201 = vmatprep.subr.bf16.mxu1 %v2371_v53 }
  0x7c   :  { %1387 = vmatmul.mubr.bf16.gmra.mrb[44].mxu1 %v2349_v54  ;;  %1297 = vmatprep.mubr.bf16.mxu0 %v2351_v55 }
  0x7d   :  { %1394 = vmatprep.mubr.bf16.mxu1 %v2353_v56  ;;  %2176 = vmatpush3.bf16.msra.mxu0 %v2371_v53 }
  0x7e   :  { %2209 = vmatpush3.bf16.msra.mxu1 %v2371_v53  ;;  %2177 = vmatprep.subr.bf16.mxu0 %v2378_v57 }
  0x7f   :  { %2202 = vmatprep.subr.bf16.mxu1 %v2378_v57 }
  0x81   :  { %2178 = vmatpush3.bf16.msra.mxu0 %v2378_v57 }
  0x82   :  { %2210 = vmatpush3.bf16.msra.mxu1 %v2378_v57 }
  0x83   :  { %1298 = vmatmul.mubr.bf16.gmra.mrb[48].mxu0 %v2355_v58 }
  0x84   :  { %1395 = vmatmul.mubr.bf16.gmra.mrb[48].mxu1 %v2356_v59  ;;  %1305 = vmatprep.mubr.bf16.mxu0 %v2358_v60 }
  0x85   :  { %1402 = vmatprep.mubr.bf16.mxu1 %v2360_v61 }
  0x8b   :  { %1306 = vmatmul.mubr.bf16.gmra.mrb[52].mxu0 %v2362_v62 }
  0x8c   :  { %1403 = vmatmul.mubr.bf16.gmra.mrb[52].mxu1 %v2363_v63  ;;  %1313 = vmatprep.mubr.bf16.mxu0 %v2365_v0 }
  0x8d   :  { %1410 = vmatprep.mubr.bf16.mxu1 %v2367_v1 }
  0x93   :  { %1314 = vmatmul.mubr.bf16.gmra.mrb[56].mxu0 %v2369_v2 }
  0x94   :  { %1411 = vmatmul.mubr.bf16.gmra.mrb[56].mxu1 %v2370_v3  ;;  %1321 = vmatprep.mubr.bf16.mxu0 %v2372_v4 }
  0x95   :  { %1418 = vmatprep.mubr.bf16.mxu1 %v2374_v5 }
  0x9b   :  { %1322 = vmatmul.mubr.bf16.gmra.mrb[60].mxu0 %v2376_v6 }
  0x9c   :  { %1419 = vmatmul.mubr.bf16.gmra.mrb[60].mxu1 %v2377_v7  ;;  %2179 = vmatprep.mubr.bf16.mxu0 %v2379_v8 }
  0x9d   :  { %2187 = vmatprep.mubr.bf16.mxu1 %v2380_v9 }
  0xa3   :  { %2180 = vmatmul.mubr.bf16.vlgmr.msra.gmra.mrb[64].mxu0 %v2381_v10 }
  0xa4   :  { %2188 = vmatmul.mubr.bf16.vlgmr.msra.gmra.mrb[64].mxu1 %v2382_v11  ;;  %2183 = vmatprep.mubr.bf16.mxu0 %v2383_v12 }
  0xa5   :  { %2191 = vmatprep.mubr.bf16.mxu1 %v2384_v13 }
  0xab   :  { %2184 = vmatmul.mubr.bf16.gmra.mrb[68].mxu0 %v2385_v14 }
  0xac   :  { %2192 = vmatmul.mubr.bf16.gmra.mrb[68].mxu1 %v2386_v15 }
  0xf6   :  { %v1907_v16 = vpop.f32.mrb[0].mxu0 }
  0xf7   :  { %v1971_v17 = vpop.f32.mrb[0].mxu1  ;;  %v1908_v18 = vpop.f32.mrb[1].mxu0 }
  0xf8   :  { %v1909_v19 = vadd.f32 %v1908_v18, %v1907_v16  ;;  %v1972_v20 = vpop.f32.mrb[1].mxu1  ;;  %v1910_v21 = vpop.f32.mrb[2].mxu0 }
  0xf9   :  { %v1973_v22 = vadd.f32 %v1972_v20, %v1971_v17  ;;  %v1974_v23 = vpop.f32.mrb[2].mxu1  ;;  %v1911_v24 = vpop.f32.mrb[3].mxu0 }
  0xfa   :  { %v1912_v25 = vadd.f32 %v1911_v24, %v1910_v21  ;;  %v1975_v26 = vpop.f32.mrb[3].mxu1 }
  0xfb   :  { %v2839_v27 = vadd.f32 %v1973_v22, %v1909_v19  ;;  %v1976_v28 = vadd.f32 %v1975_v26, %v1974_v23 }
  0xfd   :  { %v2841_v29 = vadd.f32 %v1976_v28, %v1912_v25 }
  0xfe   :  { %v1913_v30 = vpop.f32.mrb[4].mxu0 }
  0xff   :  { %v1977_v31 = vpop.f32.mrb[4].mxu1  ;;  %v1914_v32 = vpop.f32.mrb[5].mxu0 }
 0x100   :  { %v1915_v33 = vadd.f32 %v1914_v32, %v1913_v30  ;;  %v1978_v34 = vpop.f32.mrb[5].mxu1  ;;  %v1916_v35 = vpop.f32.mrb[6].mxu0 }
 0x101   :  { %v1979_v36 = vadd.f32 %v1978_v34, %v1977_v31  ;;  %v1980_v37 = vpop.f32.mrb[6].mxu1  ;;  %v1917_v38 = vpop.f32.mrb[7].mxu0 }
 0x102   :  { %v1918_v39 = vadd.f32 %v1917_v38, %v1916_v35  ;;  %v1981_v40 = vpop.f32.mrb[7].mxu1 }
 0x103   :  { %v2843_v41 = vadd.f32 %v1979_v36, %v1915_v33  ;;  %v1982_v42 = vadd.f32 %v1981_v40, %v1980_v37 }
 0x105   :  { %v2845_v43 = vadd.f32 %v1982_v42, %v1918_v39 }
 0x106   :  { %v1919_v44 = vpop.f32.mrb[8].mxu0 }
 0x107   :  { %v1983_v45 = vpop.f32.mrb[8].mxu1  ;;  %v1920_v46 = vpop.f32.mrb[9].mxu0 }
 0x108   :  { %v1921_v47 = vadd.f32 %v1920_v46, %v1919_v44  ;;  %v1984_v48 = vpop.f32.mrb[9].mxu1  ;;  %v1922_v49 = vpop.f32.mrb[10].mxu0 }
 0x109   :  { %v1985_v50 = vadd.f32 %v1984_v48, %v1983_v45  ;;  %v1986_v51 = vpop.f32.mrb[10].mxu1  ;;  %v1923_v52 = vpop.f32.mrb[11].mxu0 }
 0x10a   :  { %v1924_v53 = vadd.f32 %v1923_v52, %v1922_v49  ;;  %v1987_v54 = vpop.f32.mrb[11].mxu1 }
 0x10b   :  { %v2847_v55 = vadd.f32 %v1985_v50, %v1921_v47  ;;  %v1988_v56 = vadd.f32 %v1987_v54, %v1986_v51 }
 0x10d   :  { %v2849_v57 = vadd.f32 %v1988_v56, %v1924_v53 }
 0x10e   :  { %v1925_v58 = vpop.f32.mrb[12].mxu0 }
 0x10f   :  { %v1989_v59 = vpop.f32.mrb[12].mxu1  ;;  %v1926_v60 = vpop.f32.mrb[13].mxu0 }
 0x110   :  { %v1927_v61 = vadd.f32 %v1926_v60, %v1925_v58  ;;  %v1990_v62 = vpop.f32.mrb[13].mxu1  ;;  %v1928_v63 = vpop.f32.mrb[14].mxu0 }
 0x111   :  { %v1991_v0 = vadd.f32 %v1990_v62, %v1989_v59  ;;  %v1992_v1 = vpop.f32.mrb[14].mxu1  ;;  %v1929_v2 = vpop.f32.mrb[15].mxu0 }
 0x112   :  { %v1930_v3 = vadd.f32 %v1929_v2, %v1928_v63  ;;  %v1993_v4 = vpop.f32.mrb[15].mxu1 }
 0x113   :  { %v2851_v5 = vadd.f32 %v1991_v0, %v1927_v61  ;;  %v1994_v6 = vadd.f32 %v1993_v4, %v1992_v1 }
 0x115   :  { %v2853_v7 = vadd.f32 %v1994_v6, %v1930_v3 }
 0x116   :  { %v1931_v8 = vpop.f32.mrb[16].mxu0 }
 0x117   :  { %v1995_v9 = vpop.f32.mrb[16].mxu1  ;;  %v1932_v10 = vpop.f32.mrb[17].mxu0 }
 0x118   :  { %v1933_v11 = vadd.f32 %v1932_v10, %v1931_v8  ;;  %v1996_v12 = vpop.f32.mrb[17].mxu1  ;;  %v1934_v13 = vpop.f32.mrb[18].mxu0 }
 0x119   :  { %v1997_v14 = vadd.f32 %v1996_v12, %v1995_v9  ;;  %v1998_v15 = vpop.f32.mrb[18].mxu1  ;;  %v1935_v16 = vpop.f32.mrb[19].mxu0 }
 0x11a   :  { %v1936_v17 = vadd.f32 %v1935_v16, %v1934_v13  ;;  %v1999_v18 = vpop.f32.mrb[19].mxu1 }
 0x11b   :  { %v2855_v19 = vadd.f32 %v1997_v14, %v1933_v11  ;;  %v2000_v20 = vadd.f32 %v1999_v18, %v1998_v15 }
 0x11d   :  { %v2857_v21 = vadd.f32 %v2000_v20, %v1936_v17 }
 0x11e   :  { %v1937_v22 = vpop.f32.mrb[20].mxu0 }
 0x11f   :  { %v2001_v23 = vpop.f32.mrb[20].mxu1  ;;  %v1938_v24 = vpop.f32.mrb[21].mxu0 }
 0x120   :  { %v1939_v25 = vadd.f32 %v1938_v24, %v1937_v22  ;;  %v2002_v26 = vpop.f32.mrb[21].mxu1  ;;  %v1940_v28 = vpop.f32.mrb[22].mxu0 }
 0x121   :  { %v2003_v30 = vadd.f32 %v2002_v26, %v2001_v23  ;;  %v2004_v31 = vpop.f32.mrb[22].mxu1  ;;  %v1941_v32 = vpop.f32.mrb[23].mxu0 }
 0x122   :  { %v1942_v33 = vadd.f32 %v1941_v32, %v1940_v28  ;;  %v2005_v34 = vpop.f32.mrb[23].mxu1 }
 0x123   :  { %v2859_v35 = vadd.f32 %v2003_v30, %v1939_v25  ;;  %v2006_v36 = vadd.f32 %v2005_v34, %v2004_v31 }
 0x125   :  { %v2861_v37 = vadd.f32 %v2006_v36, %v1942_v33 }
 0x126   :  { %v1943_v38 = vpop.f32.mrb[24].mxu0 }
 0x127   :  { %v2007_v39 = vpop.f32.mrb[24].mxu1  ;;  %v1944_v40 = vpop.f32.mrb[25].mxu0 }
 0x128   :  { %v1945_v42 = vadd.f32 %v1944_v40, %v1943_v38  ;;  %v2008_v44 = vpop.f32.mrb[25].mxu1  ;;  %v1946_v45 = vpop.f32.mrb[26].mxu0 }
 0x129   :  { %v2009_v46 = vadd.f32 %v2008_v44, %v2007_v39  ;;  %v2010_v47 = vpop.f32.mrb[26].mxu1  ;;  %v1947_v48 = vpop.f32.mrb[27].mxu0 }
 0x12a   :  { %v1948_v49 = vadd.f32 %v1947_v48, %v1946_v45  ;;  %v2011_v50 = vpop.f32.mrb[27].mxu1 }
 0x12b   :  { %v2863_v51 = vadd.f32 %v2009_v46, %v1945_v42  ;;  %v2012_v52 = vadd.f32 %v2011_v50, %v2010_v47 }
 0x12d   :  { %v2865_v53 = vadd.f32 %v2012_v52, %v1948_v49 }
 0x12e   :  { %v1949_v54 = vpop.f32.mrb[28].mxu0 }
 0x12f   :  { %v2013_v56 = vpop.f32.mrb[28].mxu1  ;;  %v1950_v58 = vpop.f32.mrb[29].mxu0 }
 0x130   :  { %v1951_v59 = vadd.f32 %v1950_v58, %v1949_v54  ;;  %v2014_v60 = vpop.f32.mrb[29].mxu1  ;;  %v1952_v61 = vpop.f32.mrb[30].mxu0 }
 0x131   :  { %v2015_v62 = vadd.f32 %v2014_v60, %v2013_v56  ;;  %v2016_v63 = vpop.f32.mrb[30].mxu1  ;;  %v1953_v0 = vpop.f32.mrb[31].mxu0 }
 0x132   :  { %v1954_v1 = vadd.f32 %v1953_v0, %v1952_v61  ;;  %v2017_v2 = vpop.f32.mrb[31].mxu1 }
 0x133   :  { %v2867_v3 = vadd.f32 %v2015_v62, %v1951_v59  ;;  %v2018_v4 = vadd.f32 %v2017_v2, %v2016_v63 }
 0x135   :  { %v2869_v6 = vadd.f32 %v2018_v4, %v1954_v1 }
 0x136   :  { %v2035_v8 = vpop.f32.mrb[32].mxu0 }
 0x137   :  { %v2099_v9 = vpop.f32.mrb[32].mxu1  ;;  %v2036_v10 = vpop.f32.mrb[33].mxu0 }
 0x138   :  { %v2037_v11 = vadd.f32 %v2036_v10, %v2035_v8  ;;  %v2100_v12 = vpop.f32.mrb[33].mxu1  ;;  %v2038_v13 = vpop.f32.mrb[34].mxu0 }
 0x139   :  { %v2101_v14 = vadd.f32 %v2100_v12, %v2099_v9  ;;  %v2102_v15 = vpop.f32.mrb[34].mxu1  ;;  %v2039_v16 = vpop.f32.mrb[35].mxu0 }
 0x13a   :  { %v1268_v17 = vadd.f32 %v2037_v11, %v2839_v27  ;;  %v2040_v18 = vadd.f32 %v2039_v16, %v2038_v13  ;;  %v2103_v20 = vpop.f32.mrb[35].mxu1 }
 0x13b   :  { %v2104_v22 = vadd.f32 %v2103_v20, %v2102_v15 }
 0x13c   :  { %v1271_v23 = vadd.f32 %v2040_v18, %v2841_v29  ;;  %v2873_v24 = vadd.f32 %v2101_v14, %v1268_v17 }
 0x13e   :  { %v2041_v25 = vpop.f32.mrb[36].mxu0  ;;  %v2875_v26 = vadd.f32 %v2104_v22, %v1271_v23 }
 0x13f   :  { %v2105_v28 = vpop.f32.mrb[36].mxu1  ;;  %v2042_v30 = vpop.f32.mrb[37].mxu0 }
 0x140   :  { %v2043_v31 = vadd.f32 %v2042_v30, %v2041_v25  ;;  %v2106_v32 = vpop.f32.mrb[37].mxu1  ;;  %v2044_v33 = vpop.f32.mrb[38].mxu0 }
 0x141   :  { %v2107_v34 = vadd.f32 %v2106_v32, %v2105_v28  ;;  %v2108_v36 = vpop.f32.mrb[38].mxu1  ;;  %v2045_v38 = vpop.f32.mrb[39].mxu0 }
 0x142   :  { %v1276_v27 = vadd.f32 %v2043_v31, %v2843_v41  ;;  %v2046_v39 = vadd.f32 %v2045_v38, %v2044_v33  ;;  %v2109_v40 = vpop.f32.mrb[39].mxu1 }
 0x143   :  { %v2110_v42 = vadd.f32 %v2109_v40, %v2108_v36 }
 0x144   :  { %v1279_v29 = vadd.f32 %v2046_v39, %v2845_v43  ;;  %v2879_v44 = vadd.f32 %v2107_v34, %v1276_v27 }
 0x146   :  { %v2047_v45 = vpop.f32.mrb[40].mxu0  ;;  %v2881_v46 = vadd.f32 %v2110_v42, %v1279_v29 }
 0x147   :  { %v2111_v47 = vpop.f32.mrb[40].mxu1  ;;  %v2048_v48 = vpop.f32.mrb[41].mxu0 }
 0x148   :  { %v2049_v49 = vadd.f32 %v2048_v48, %v2047_v45  ;;  %v2112_v50 = vpop.f32.mrb[41].mxu1  ;;  %v2050_v52 = vpop.f32.mrb[42].mxu0 }
 0x149   :  { %v2113_v54 = vadd.f32 %v2112_v50, %v2111_v47  ;;  %v2114_v56 = vpop.f32.mrb[42].mxu1  ;;  %v2051_v58 = vpop.f32.mrb[43].mxu0 }
 0x14a   :  { %v1284_v41 = vadd.f32 %v2049_v49, %v2847_v55  ;;  %v2052_v59 = vadd.f32 %v2051_v58, %v2050_v52  ;;  %v2115_v60 = vpop.f32.mrb[43].mxu1 }
 0x14b   :  { %v2116_v61 = vadd.f32 %v2115_v60, %v2114_v56 }
 0x14c   :  { %v1287_v43 = vadd.f32 %v2052_v59, %v2849_v57  ;;  %v2885_v62 = vadd.f32 %v2113_v54, %v1284_v41 }
 0x14e   :  { %v2053_v63 = vpop.f32.mrb[44].mxu0  ;;  %v2887_v0 = vadd.f32 %v2116_v61, %v1287_v43 }
 0x14f   :  { %v2117_v1 = vpop.f32.mrb[44].mxu1  ;;  %v2054_v2 = vpop.f32.mrb[45].mxu0 }
 0x150   :  { %v2055_v4 = vadd.f32 %v2054_v2, %v2053_v63  ;;  %v2118_v8 = vpop.f32.mrb[45].mxu1  ;;  %v2056_v9 = vpop.f32.mrb[46].mxu0 }
 0x151   :  { %v2119_v10 = vadd.f32 %v2118_v8, %v2117_v1  ;;  %v2120_v11 = vpop.f32.mrb[46].mxu1  ;;  %v2057_v12 = vpop.f32.mrb[47].mxu0 }
 0x152   :  { %v1292_v55 = vadd.f32 %v2055_v4, %v2851_v5  ;;  %v2058_v13 = vadd.f32 %v2057_v12, %v2056_v9  ;;  %v2121_v14 = vpop.f32.mrb[47].mxu1 }
 0x153   :  { %v2122_v15 = vadd.f32 %v2121_v14, %v2120_v11 }
 0x154   :  { %v1295_v57 = vadd.f32 %v2058_v13, %v2853_v7  ;;  %v2891_v16 = vadd.f32 %v2119_v10, %v1292_v55 }
 0x156   :  { %v2059_v17 = vpop.f32.mrb[48].mxu0  ;;  %v2893_v18 = vadd.f32 %v2122_v15, %v1295_v57 }
 0x157   :  { %v2123_v20 = vpop.f32.mrb[48].mxu1  ;;  %v2060_v22 = vpop.f32.mrb[49].mxu0 }
 0x158   :  { %v2061_v23 = vadd.f32 %v2060_v22, %v2059_v17  ;;  %v2124_v25 = vpop.f32.mrb[49].mxu1  ;;  %v2062_v28 = vpop.f32.mrb[50].mxu0 }
 0x159   :  { %v2125_v30 = vadd.f32 %v2124_v25, %v2123_v20  ;;  %v2126_v31 = vpop.f32.mrb[50].mxu1  ;;  %v2063_v32 = vpop.f32.mrb[51].mxu0 }
 0x15a   :  { %v1300_v5 = vadd.f32 %v2061_v23, %v2855_v19  ;;  %v2064_v33 = vadd.f32 %v2063_v32, %v2062_v28  ;;  %v2127_v34 = vpop.f32.mrb[51].mxu1 }
 0x15b   :  { %v2128_v36 = vadd.f32 %v2127_v34, %v2126_v31 }
 0x15c   :  { %v1303_v7 = vadd.f32 %v2064_v33, %v2857_v21  ;;  %v1397_v38 = vadd.f32 %v2125_v30, %v1300_v5  ;;  %v2912_v33 = vld [vmem:[%s2991_s2] ss:$0 sm:$0xff] }
 0x15e   :  { %v2065_v27 = vpop.f32.mrb[52].mxu0  ;;  %v2897_v39 = vadd.f32 %v2128_v36, %v1303_v7 }
 0x15f   :  { %v2129_v40 = vpop.f32.mrb[52].mxu1  ;;  %v2066_v42 = vpop.f32.mrb[53].mxu0 }
 0x160   :  { %v2067_v29 = vadd.f32 %v2066_v42, %v2065_v27  ;;  %v2130_v45 = vpop.f32.mrb[53].mxu1  ;;  %v2068_v47 = vpop.f32.mrb[54].mxu0 }
 0x161   :  { %v2131_v48 = vadd.f32 %v2130_v45, %v2129_v40  ;;  %v2132_v49 = vpop.f32.mrb[54].mxu1  ;;  %v2069_v50 = vpop.f32.mrb[55].mxu0 }
 0x162   :  { %v1308_v52 = vadd.f32 %v2067_v29, %v2859_v35  ;;  %v2070_v19 = vadd.f32 %v2069_v50, %v2068_v47  ;;  %v2133_v54 = vpop.f32.mrb[55].mxu1 }
 0x163   :  { %v2134_v56 = vadd.f32 %v2133_v54, %v2132_v49 }
 0x164   :  { %v1311_v58 = vadd.f32 %v2070_v19, %v2861_v37  ;;  %v1405_v21 = vadd.f32 %v2131_v48, %v1308_v52 }
 0x166   :  { %v2071_v41 = vpop.f32.mrb[56].mxu0  ;;  %v1408_v59 = vadd.f32 %v2134_v56, %v1311_v58 }
 0x167   :  { %v2135_v60 = vpop.f32.mrb[56].mxu1  ;;  %v2072_v61 = vpop.f32.mrb[57].mxu0 }
 0x168   :  { %v2073_v43 = vadd.f32 %v2072_v61, %v2071_v41  ;;  %v2136_v63 = vpop.f32.mrb[57].mxu1  ;;  %v2074_v1 = vpop.f32.mrb[58].mxu0 }
 0x169   :  { %v2137_v2 = vadd.f32 %v2136_v63, %v2135_v60  ;;  %v2138_v4 = vpop.f32.mrb[58].mxu1  ;;  %v2075_v8 = vpop.f32.mrb[59].mxu0 }
 0x16a   :  { %v1316_v9 = vadd.f32 %v2073_v43, %v2863_v51  ;;  %v2076_v10 = vadd.f32 %v2075_v8, %v2074_v1  ;;  %v2139_v35 = vpop.f32.mrb[59].mxu1 }
 0x16b   :  { %v2140_v11 = vadd.f32 %v2139_v35, %v2138_v4 }
 0x16c   :  { %v1319_v12 = vadd.f32 %v2076_v10, %v2865_v53  ;;  %v2903_v55 = vadd.f32 %v2137_v2, %v1316_v9 }
 0x16e   :  { %v2077_v37 = vpop.f32.mrb[60].mxu0  ;;  %v2905_v13 = vadd.f32 %v2140_v11, %v1319_v12 }
 0x16f   :  { %v2141_v14 = vpop.f32.mrb[60].mxu1  ;;  %v2078_v15 = vpop.f32.mrb[61].mxu0 }
 0x170   :  { %v2079_v57 = vadd.f32 %v2078_v15, %v2077_v37  ;;  %v2142_v17 = vpop.f32.mrb[61].mxu1  ;;  %v2080_v20 = vpop.f32.mrb[62].mxu0 }
 0x171   :  { %v2143_v22 = vadd.f32 %v2142_v17, %v2141_v14  ;;  %v2144_v23 = vpop.f32.mrb[62].mxu1  ;;  %v2081_v25 = vpop.f32.mrb[63].mxu0 }
 0x172   :  { %v1324_v51 = vadd.f32 %v2079_v57, %v2867_v3  ;;  %v2082_v28 = vadd.f32 %v2081_v25, %v2080_v20  ;;  %v2145_v30 = vpop.f32.mrb[63].mxu1  ;;  %v2920_v3 = vld [vmem:[%s2991_s2 + $0x1] ss:$0 sm:$0xff] }
 0x173   :  { %v2146_v31 = vadd.f32 %v2145_v30, %v2144_v23 }
 0x174   :  { %v1327_v53 = vadd.f32 %v2082_v28, %v2869_v6  ;;  %v1421_v32 = vadd.f32 %v2143_v22, %v1324_v51 }
 0x176   :  { %v2181_v5 = vpop.f32.mrb[64].mxu0  ;;  %v2914_v34 = vadd.f32 %v2146_v31, %v1327_v53 }
 0x177   :  { %v1470_v36 = vadd.f32 %v2181_v5, %v2879_v44  ;;  %v2189_v7 = vpop.f32.mrb[64].mxu1  ;;  %v1461_v27 = vpop.f32.mrb[65].mxu0 }
 0x178   :  { %v1502_v40 = vadd.f32 %v2189_v7, %v1405_v21  ;;  %v1462_v6 = vadd.f32 %v1461_v27, %v2873_v24  ;;  %v1493_v42 = vpop.f32.mrb[65].mxu1  ;;  %v2182_v29 = vpop.f32.mrb[66].mxu0 }
 0x179   :  { %v1531_v45 = vmul.f32 %v2912_v33, %v1470_v36  ;;  %v1494_v47 = vadd.f32 %v1493_v42, %v1397_v38  ;;  %v1473_v48 = vadd.f32 %v2182_v29, %v2881_v46  ;;  %v2190_v49 = vpop.f32.mrb[66].mxu1  ;;  %v1464_v50 = vpop.f32.mrb[67].mxu0 }
 0x17a   :  { %v1539_v44 = vmul.f32 %v2912_v33, %v1502_v40  ;;  %v1529_v52 = vmul.f32 %v2912_v33, %v1462_v6  ;;  %v1505_v19 = vadd.f32 %v2190_v49, %v1408_v59  ;;  %v1465_v54 = vadd.f32 %v1464_v50, %v2875_v26  ;;  %v1496_v56 = vpop.f32.mrb[67].mxu1 }
 0x17b   :  { %v1552_v58 = vadd.f32 %v2920_v3, %v1531_v45  ;;  %v1537_v24 = vmul.f32 %v2912_v33, %v1494_v47  ;;  %v1532_v21 = vmul.f32 %v2912_v33, %v1473_v48  ;;  %v1497_v38 = vadd.f32 %v1496_v56, %v2897_v39 }
 0x17c   :  { %v1560_v46 = vadd.f32 %v2920_v3, %v1539_v44  ;;  %v1550_v41 = vadd.f32 %v2920_v3, %v1529_v52  ;;  %v1540_v60 = vmul.f32 %v2912_v33, %v1505_v19  ;;  %v1530_v61 = vmul.f32 %v2912_v33, %v1465_v54 }
 0x17d   :  { %v1568_v59 = vmax.f32 %v1552_v58, 0.0  ;;  %v1558_v26 = vadd.f32 %v2920_v3, %v1537_v24  ;;  %v1553_v43 = vadd.f32 %v2920_v3, %v1532_v21  ;;  %v1538_v63 = vmul.f32 %v2912_v33, %v1497_v38 }
 0x17e   :  { %v1576_v1 = vmax.f32 %v1560_v46, 0.0  ;;  %v1566_v2 = vmax.f32 %v1550_v41, 0.0  ;;  %v1561_v4 = vadd.f32 %v2920_v3, %v1540_v60  ;;  %v1551_v39 = vadd.f32 %v2920_v3, %v1530_v61  ;;  %v2185_v8 = vpop.f32.mrb[68].mxu0 }
 0x17f   :  { %v1574_v9 = vmax.f32 %v1558_v26, 0.0  ;;  %v1569_v10 = vmax.f32 %v1553_v43, 0.0  ;;  %v1559_v35 = vadd.f32 %v2920_v3, %v1538_v63  ;;  %v1486_v11 = vadd.f32 %v2185_v8, %v2891_v16  ;;  %v2193_v12 = vpop.f32.mrb[68].mxu1  ;;  %v1477_v37 = vpop.f32.mrb[69].mxu0 }
 0x180   :  { %v1577_v14 = vmax.f32 %v1561_v4, 0.0  ;;  %v1567_v15 = vmax.f32 %v1551_v39, 0.0  ;;  %v1518_v57 = vadd.f32 %v2193_v12, %v1421_v32  ;;  %v1478_v17 = vadd.f32 %v1477_v37, %v2885_v62  ;;  %v1509_v20 = vpop.f32.mrb[69].mxu1  ;;  %v2186_v22 = vpop.f32.mrb[70].mxu0 }
 0x181   :  { %v1852_v23 = vpack.c.bf16 %v1569_v10, %v1568_v59  ;;  %v1575_v25 = vmax.f32 %v1559_v35, 0.0  ;;  %v1535_v51 = vmul.f32 %v2912_v33, %v1486_v11  ;;  %v1510_v28 = vadd.f32 %v1509_v20, %v2903_v55  ;;  %v2194_v30 = vpop.f32.mrb[70].mxu1  ;;  %v1480_v31 = vpop.f32.mrb[71].mxu0 }
 0x182   :  { %v1872_v53 = vpack.c.bf16 %v1577_v14, %v1576_v1  ;;  %v1847_v5 = vpack.c.bf16 %v1567_v15, %v1566_v2  ;;  %v1543_v16 = vmul.f32 %v2912_v33, %v1518_v57  ;;  %v1533_v36 = vmul.f32 %v2912_v33, %v1478_v17  ;;  %v1512_v7 = vpop.f32.mrb[71].mxu1 }
 0x183   :  { %1884 = vst [vmem:[%s2992_s3 + $0x8] sm:$0xff] %v1852_v23   ;;  %v1867_v62 = vpack.c.bf16 %v1575_v25, %v1574_v9  ;;  %v1541_v32 = vmul.f32 %v2912_v33, %v1510_v28  ;;  %v1489_v27 = vadd.f32 %v2186_v22, %v2893_v18  ;;  %v1521_v55 = vadd.f32 %v2194_v30, %v2914_v34 }
 0x184   :  { %1888 = vst [vmem:[%s2992_s3 + $0x28] sm:$0xff] %v1872_v53   ;;  %1848 = vst [vmem:[%s2992_s3] sm:$0xff] %v1847_v5   ;;  %v1481_v40 = vadd.f32 %v1480_v31, %v2887_v0  ;;  %v1556_v6 = vadd.f32 %v2920_v3, %v1535_v51  ;;  %v1513_v42 = vadd.f32 %v1512_v7, %v2905_v13 }
 0x185   :  { %1887 = vst [vmem:[%s2992_s3 + $0x20] sm:$0xff] %v1867_v62   ;;  %v1536_v18 = vmul.f32 %v2912_v33, %v1489_v27  ;;  %v1564_v29 = vadd.f32 %v2920_v3, %v1543_v16  ;;  %v1554_v45 = vadd.f32 %v2920_v3, %v1533_v36  ;;  %v1544_v47 = vmul.f32 %v2912_v33, %v1521_v55 }
 0x186   :  { %v1534_v34 = vmul.f32 %v2912_v33, %v1481_v40  ;;  %v1562_v0 = vadd.f32 %v2920_v3, %v1541_v32  ;;  %v1542_v49 = vmul.f32 %v2912_v33, %v1513_v42  ;;  %v1572_v52 = vmax.f32 %v1556_v6, 0.0 }
 0x187   :  { %v1557_v48 = vadd.f32 %v2920_v3, %v1536_v18  ;;  %v1565_v50 = vadd.f32 %v2920_v3, %v1544_v47  ;;  %v1580_v54 = vmax.f32 %v1564_v29, 0.0  ;;  %v1570_v56 = vmax.f32 %v1554_v45, 0.0 }
 0x188   :  { %v1555_v44 = vadd.f32 %v2920_v3, %v1534_v34  ;;  %v1563_v19 = vadd.f32 %v2920_v3, %v1542_v49  ;;  %v1578_v21 = vmax.f32 %v1562_v0, 0.0 }
 0x189   :  { %v1573_v13 = vmax.f32 %v1557_v48, 0.0  ;;  %v1581_v58 = vmax.f32 %v1565_v50, 0.0 }
 0x18a   :  { %v1571_v24 = vmax.f32 %v1555_v44, 0.0  ;;  %v1579_v46 = vmax.f32 %v1563_v19, 0.0 }
 0x18b   :  { %v1862_v38 = vpack.c.bf16 %v1573_v13, %v1572_v52  ;;  %v1882_v41 = vpack.c.bf16 %v1581_v58, %v1580_v54 }
 0x18c   :  { %v1857_v60 = vpack.c.bf16 %v1571_v24, %v1570_v56  ;;  %v1877_v33 = vpack.c.bf16 %v1579_v46, %v1578_v21 }
 0x18d   :  { %1886 = vst [vmem:[%s2992_s3 + $0x18] sm:$0xff] %v1862_v38   ;;  %1890 = vst [vmem:[%s2992_s3 + $0x38] sm:$0xff] %v1882_v41  }
 0x18e   :  { %1885 = vst [vmem:[%s2992_s3 + $0x10] sm:$0xff] %v1857_v60   ;;  %1889 = vst [vmem:[%s2992_s3 + $0x30] sm:$0xff] %v1877_v33  }

</bundles_post_ra>
